<compile_context>
chip_gen: v7x
topology: tpu7x:2x2x1
jax: 0.10.0
libtpu: 0.0.40
codegen_flags: <defaults>
</compile_context>

<pallas_src>
import functools

import jax
import jax.numpy as jnp
import numpy as np
from jax.experimental import pallas as pl
from jax.experimental.pallas import tpu as pltpu

WIDTH = 64      # module globals WIDTH/HEIGHT chosen so the LeNet dims work out
HEIGHT = 64     # (downscale=4 -> 16x16, two conv+pool stages -> 2x2x8 = 32 feats)
CLASSES = 10
N_BATCH = 2
C = 8           # channels after the 1x1 expansion convs
FC1 = 64        # fc1 output features
_LANES = 128    # lane width of the packed parameter slab


# ----------------------------------------------------------------------------
# Parameters (deterministic synthetic init, torch shapes)
# ----------------------------------------------------------------------------
def init_params(key, classes=CLASSES):
    ks = jax.random.split(key, 10)
    rnd = lambda k, s, sc: (sc * jax.random.normal(k, s)).astype(jnp.float32)
    return {
        "c1": rnd(ks[0], (1, 1, 3, 1), 0.4),      # QConv2d (3,1), 1->1, bias=False
        "c2": rnd(ks[1], (1, 1, 1, 3), 0.4),      # QConv2d (1,3), 1->1
        "c3": rnd(ks[2], (8, 1, 1, 1), 0.4),      # QConv2d 1x1,   1->8
        "c4": rnd(ks[3], (8, 8, 3, 1), 0.2),      # QConv2d (3,1), 8->8
        "c5": rnd(ks[4], (8, 8, 1, 3), 0.2),      # QConv2d (1,3), 8->8
        "c6": rnd(ks[5], (8, 8, 1, 1), 0.2),      # QConv2d 1x1,   8->8
        "fc1_w": rnd(ks[6], (FC1, 32), 0.15),     # QLinear(32 -> 64)
        "fc1_b": rnd(ks[7], (FC1,), 0.05),
        "fc2_w": rnd(ks[8], (classes, FC1), 0.15),  # QLinear(64 -> classes)
        "fc2_b": rnd(ks[9], (classes,), 0.05),
    }


# ----------------------------------------------------------------------------
# One-time host-side packing: every conv / pool / fc becomes a small matrix,
# all matrices are stacked into a single (R, 128) f32 slab (one DMA).
# Layout convention inside the kernel:
#   activation rows = (batch b, row h) flattened,  activation lanes = w*C + c.
# ----------------------------------------------------------------------------
def _pack_params(params, n, classes):
    g = lambda k: np.asarray(jax.device_get(params[k]), np.float32)
    k1 = g("c1")[0, 0, :, 0]           # (3,)   conv1 taps (along H)
    k2 = g("c2")[0, 0, 0, :]           # (3,)   conv2 taps (along W)
    w3 = g("c3")[:, 0, 0, 0]           # (8,)   conv3 1->8
    w4 = g("c4")[:, :, :, 0]           # (cout, cin, 3)
    w5 = g("c5")[:, :, 0, :]           # (cout, cin, 3)
    w6 = g("c6")[:, :, 0, 0]           # (cout, cin)
    fc1w, fc1b = g("fc1_w"), g("fc1_b")
    fc2w, fc2b = g("fc2_w"), g("fc2_b")

    mats = []
    add = lambda name, m: mats.append((name, np.asarray(m, np.float32)))

    # --- MaxPool2d(4) selection matrices (0/1, exact) ---------------------
    # rsel rows [16i:16i+16]: picks input row 4r+i ;  csel cols [16j:16j+16]:
    # picks input col 4c+j.  Max over the 4 taps is done elementwise in-kernel.
    rsel = np.zeros((4 * 16, 64), np.float32)
    csel = np.zeros((64, 4 * 16), np.float32)
    for i in range(4):
        for r in range(16):
            rsel[16 * i + r, 4 * r + i] = 1.0
            csel[4 * r + i, 16 * i + r] = 1.0
    add("rsel", rsel)
    add("csel", csel)

    # --- conv1 (3,1), 1->1: block-Toeplitz over (batch, H) rows ------------
    A1 = np.zeros((n * 14, n * 16), np.float32)
    for b in range(n):
        for h1 in range(14):
            for t in range(3):
                A1[14 * b + h1, 16 * b + h1 + t] = k1[t]
    add("A1", A1)

    # --- conv2 (1,3), 1->1: Toeplitz acting on lanes (W) --------------------
    B2 = np.zeros((16, 14), np.float32)
    for w1 in range(14):
        for s in range(3):
            B2[w1 + s, w1] = k2[s]
    add("B2", B2)

    # --- conv3 1x1, 1->8: expand lanes w -> (w, c) --------------------------
    E3 = np.zeros((14, 14 * C), np.float32)
    for w1 in range(14):
        E3[w1, w1 * C:(w1 + 1) * C] = w3
    add("E3", E3)

    # --- MaxPool2d(2) #1: 14x14 -> 7x7 selectors ----------------------------
    for d in range(2):
        Sh = np.zeros((n * 7, n * 14), np.float32)
        for b in range(n):
            for h2 in range(7):
                Sh[7 * b + h2, 14 * b + 2 * h2 + d] = 1.0
        add(f"Sh{d}", Sh)
    for d in range(2):
        Sw = np.zeros((14 * C, 7 * C), np.float32)
        for w2 in range(7):
            for c in range(C):
                Sw[(2 * w2 + d) * C + c, w2 * C + c] = 1.0
        add(f"Sw{d}", Sw)

    # --- conv4 (3,1), 8->8: 3 row-shift selectors + one fused contraction ---
    for t in range(3):
        R = np.zeros((n * 5, n * 7), np.float32)
        for b in range(n):
            for h3 in range(5):
                R[5 * b + h3, 7 * b + h3 + t] = 1.0
        add(f"R4_{t}", R)
    W4 = np.zeros((3 * 7 * C, 7 * C), np.float32)       # rows = (t, w, cin)
    for t in range(3):
        for w2 in range(7):
            W4[t * 7 * C + w2 * C: t * 7 * C + (w2 + 1) * C,
               w2 * C:(w2 + 1) * C] = w4[:, :, t].T      # [cin, cout]
    add("W4", W4)

    # --- conv5 (1,3), 8->8: pure lane-side conv+mix -------------------------
    M5 = np.zeros((7 * C, 5 * C), np.float32)
    for w3_ in range(5):
        for s in range(3):
            M5[(w3_ + s) * C:(w3_ + s + 1) * C,
               w3_ * C:(w3_ + 1) * C] = w5[:, :, s].T
    add("M5", M5)

    # --- conv6 1x1, 8->8: block-diagonal channel mix -------------------------
    M6 = np.zeros((5 * C, 5 * C), np.float32)
    for w3_ in range(5):
        M6[w3_ * C:(w3_ + 1) * C, w3_ * C:(w3_ + 1) * C] = w6.T
    add("M6", M6)

    # --- MaxPool2d(2) #2: 5x5 -> 2x2 (floor; index 4 dropped) ---------------
    for d in range(2):
        Qh = np.zeros((n * 2, n * 5), np.float32)
        for b in range(n):
            for h4 in range(2):
                Qh[2 * b + h4, 5 * b + 2 * h4 + d] = 1.0
        add(f"Qh{d}", Qh)
    for d in range(2):
        Qw = np.zeros((5 * C, 2 * C), np.float32)
        for w4_ in range(2):
            for c in range(C):
                Qw[(2 * w4_ + d) * C + c, w4_ * C + c] = 1.0
        add(f"Qw{d}", Qw)

    # --- fc1: kernel flatten order is (h, w, c); torch order is (c, h, w) ---
    W1 = np.zeros((2 * 2 * C, FC1), np.float32)
    for h4 in range(2):
        for w4_ in range(2):
            for c in range(C):
                W1[2 * C * h4 + C * w4_ + c, :] = fc1w[:, c * 4 + h4 * 2 + w4_]
    add("W1", W1)
    add("b1", fc1b.reshape(1, -1))
    add("W2", fc2w.T)                                    # (64, classes)
    add("b2", fc2b.reshape(1, -1))

    # --- coalesce everything into one (R, 128) slab, 8-row aligned bands ----
    slots, chunks, row = {}, [], 0
    for name, m in mats:
        r, cols = m.shape
        assert cols <= _LANES, name
        pr = (-r) % 8
        buf = np.zeros((r + pr, _LANES), np.float32)
        buf[:r, :cols] = m
        slots[name] = (row, r, cols)
        chunks.append(buf)
        row += r + pr
    slab = jnp.asarray(np.concatenate(chunks, axis=0))
    return slab, slots


# ----------------------------------------------------------------------------
# The single fused kernel
# ----------------------------------------------------------------------------
def _lenet_kernel(x_ref, slab_ref, logits_ref, probs_ref, *, slots, n):
    def W(name):                                   # static, 8-aligned slab slice
        off, r, cols = slots[name]
        return slab_ref[off:off + r, 0:cols]

    dot = functools.partial(jnp.dot, preferred_element_type=jnp.float32)

    # ---- MaxPool2d(4): (n,1,64,64) -> (n*16, 16); rows=(b,h), lanes=w -------
    xc = jnp.concatenate([x_ref[b, 0] for b in range(n)], axis=1)     # (64, 64n)
    rsel, csel = W("rsel"), W("csel")
    rm = dot(rsel[0:16, :], xc)                                       # (16, 64n)
    for i in range(1, 4):
        rm = jnp.maximum(rm, dot(rsel[16 * i:16 * (i + 1), :], xc))
    rm = jnp.concatenate([rm[:, 64 * b:64 * (b + 1)] for b in range(n)],
                         axis=0)                                      # (16n, 64)
    pm = dot(rm, csel[:, 0:16])                                       # (16n, 16)
    for j in range(1, 4):
        pm = jnp.maximum(pm, dot(rm, csel[:, 16 * j:16 * (j + 1)]))

    # ---- conv1 (3,1) -> conv2 (1,3) -> conv3 (1x1, 1->8) + ReLU -------------
    y1 = dot(W("A1"), pm)                                             # (14n, 16)
    z2 = dot(y1, W("B2"))                                             # (14n, 14)
    u3 = jnp.maximum(dot(z2, W("E3")), 0.0)                           # (14n, 112)

    # ---- MaxPool2d(2): 14x14 -> 7x7 -----------------------------------------
    hm = jnp.maximum(dot(W("Sh0"), u3), dot(W("Sh1"), u3))            # (7n, 112)
    v = jnp.maximum(dot(hm, W("Sw0")), dot(hm, W("Sw1")))             # (7n, 56)

    # ---- conv4 (3,1, 8->8): stack 3 shifted slabs on lanes, one contraction -
    vs = jnp.concatenate([dot(W(f"R4_{t}"), v) for t in range(3)],
                         axis=1)                                      # (5n, 168)
    a4 = dot(vs, W("W4"))                                             # (5n, 56)
    # ---- conv5 (1,3, 8->8) and conv6 (1x1, 8->8) + ReLU ---------------------
    a5 = dot(a4, W("M5"))                                             # (5n, 40)
    a6 = jnp.maximum(dot(a5, W("M6")), 0.0)                           # (5n, 40)

    # ---- MaxPool2d(2): 5x5 -> 2x2 (floor mode) ------------------------------
    hm2 = jnp.maximum(dot(W("Qh0"), a6), dot(W("Qh1"), a6))           # (2n, 40)
    q = jnp.maximum(dot(hm2, W("Qw0")), dot(hm2, W("Qw1")))           # (2n, 16)

    # ---- flatten (order folded into W1) + fc1 + ReLU + fc2 ------------------
    # TODO(synk): Dropout(p=0.3) treated as inference-mode identity.
    feats = jnp.concatenate(
        [jnp.concatenate([q[2 * b:2 * b + 1, :], q[2 * b + 1:2 * b + 2, :]],
                         axis=1) for b in range(n)], axis=0)          # (n, 32)
    h1 = jnp.maximum(dot(feats, W("W1")) + W("b1"), 0.0)              # (n, 64)
    logits = dot(h1, W("W2")) + W("b2")                               # (n, classes)

    # ---- softmax (dim=1), denominator on the EUP ----------------------------
    mx = jnp.max(logits, axis=-1, keepdims=True)
    e = jnp.exp(logits - mx)
    inv = pl.reciprocal(jnp.sum(e, axis=-1, keepdims=True), approx=True)

    logits_ref[...] = logits
    probs_ref[...] = e * inv


# ----------------------------------------------------------------------------
# Wrapper: pack once, then a single pallas_call per forward
# ----------------------------------------------------------------------------
def make_lenet_forward(params, n=N_BATCH, classes=CLASSES):
    slab, slots = _pack_params(params, n, classes)     # one-time host-side prep
    kernel = functools.partial(_lenet_kernel, slots=slots, n=n)
    vmem = pl.BlockSpec(memory_space=pltpu.MemorySpace.VMEM)
    call = pl.pallas_call(
        kernel,
        out_shape=(jax.ShapeDtypeStruct((n, classes), jnp.float32),
                   jax.ShapeDtypeStruct((n, classes), jnp.float32)),
        in_specs=[vmem, vmem],
        out_specs=(vmem, vmem),
    )

    def forward(x_nchw):
        return call(x_nchw.astype(jnp.float32), slab)

    return forward


if __name__ == "__main__":
    key = jax.random.PRNGKey(0)
    pkey, xkey = jax.random.split(key)
    params = init_params(pkey, CLASSES)
    x = jax.random.normal(xkey, (N_BATCH, 1, HEIGHT, WIDTH), dtype=jnp.float32)

    fwd = jax.jit(make_lenet_forward(params, n=N_BATCH, classes=CLASSES))
    logits, probs = fwd(x)
    jax.block_until_ready((logits, probs))

    assert logits.shape == (N_BATCH, CLASSES)
    assert probs.shape == (N_BATCH, CLASSES)
    # approx reciprocal in the softmax -> allow a small normalization slack
    assert bool(jnp.all(jnp.abs(jnp.sum(probs, axis=-1) - 1.0) < 1e-2))
    print("KERNEL_OK")
</pallas_src>

<mosaic_0001>
module attributes {stable_mosaic.version = 11 : i64} {
  func.func @_lenet_kernel(%arg0: memref<2x1x64x64xf32, #tpu.memory_space<vmem>>, %arg1: memref<968x128xf32, #tpu.memory_space<vmem>>, %arg2: memref<2x10xf32, #tpu.memory_space<vmem>>, %arg3: memref<2x10xf32, #tpu.memory_space<vmem>>) attributes {dimension_semantics = [], scalar_prefetch = 0 : i64, scratch_operands = 0 : i64, tpu.core_type = #tpu.core_type<tc>} {
    %c0 = arith.constant 0 : index
    %c0_0 = arith.constant 0 : index
    %c0_1 = arith.constant 0 : index
    %c0_2 = arith.constant 0 : index
    %0 = vector.load %arg0[%c0, %c0_0, %c0_1, %c0_2] : memref<2x1x64x64xf32, #tpu.memory_space<vmem>>, vector<1x1x64x64xf32>
    %1 = vector.shape_cast %0 : vector<1x1x64x64xf32> to vector<64x64xf32>
    %c1 = arith.constant 1 : index
    %c0_3 = arith.constant 0 : index
    %c0_4 = arith.constant 0 : index
    %c0_5 = arith.constant 0 : index
    %2 = vector.load %arg0[%c1, %c0_3, %c0_4, %c0_5] : memref<2x1x64x64xf32, #tpu.memory_space<vmem>>, vector<1x1x64x64xf32>
    %3 = vector.shape_cast %2 : vector<1x1x64x64xf32> to vector<64x64xf32>
    %4 = tpu.concatenate %1, %3 in 1 : vector<64x64xf32>, vector<64x64xf32> -> vector<64x128xf32>
    %c0_6 = arith.constant 0 : index
    %c0_7 = arith.constant 0 : index
    %5 = vector.load %arg1[%c0_6, %c0_7] : memref<968x128xf32, #tpu.memory_space<vmem>>, vector<64x64xf32>
    %c64 = arith.constant 64 : index
    %c0_8 = arith.constant 0 : index
    %6 = vector.load %arg1[%c64, %c0_8] : memref<968x128xf32, #tpu.memory_space<vmem>>, vector<64x64xf32>
    %7 = vector.extract_strided_slice %5 {offsets = [0, 0], sizes = [16, 64], strides = [1, 1]} : vector<64x64xf32> to vector<16x64xf32>
    %cst = arith.constant dense<0.000000e+00> : vector<16x128xf32>
    %8 = tpu.matmul %7, %4, %cst {dimension_numbers = #tpu.dot_dimension_numbers<[1], [0], [0], [1], [0, 0, 1, 1], [], []>} : vector<16x64xf32>, vector<64x128xf32>, vector<16x128xf32> -> vector<16x128xf32>
    %9 = vector.extract_strided_slice %5 {offsets = [16, 0], sizes = [16, 64], strides = [1, 1]} : vector<64x64xf32> to vector<16x64xf32>
    %cst_9 = arith.constant dense<0.000000e+00> : vector<16x128xf32>
    %10 = tpu.matmul %9, %4, %cst_9 {dimension_numbers = #tpu.dot_dimension_numbers<[1], [0], [0], [1], [0, 0, 1, 1], [], []>} : vector<16x64xf32>, vector<64x128xf32>, vector<16x128xf32> -> vector<16x128xf32>
    %11 = arith.maximumf %8, %10 : vector<16x128xf32>
    %12 = vector.extract_strided_slice %5 {offsets = [32, 0], sizes = [16, 64], strides = [1, 1]} : vector<64x64xf32> to vector<16x64xf32>
    %cst_10 = arith.constant dense<0.000000e+00> : vector<16x128xf32>
    %13 = tpu.matmul %12, %4, %cst_10 {dimension_numbers = #tpu.dot_dimension_numbers<[1], [0], [0], [1], [0, 0, 1, 1], [], []>} : vector<16x64xf32>, vector<64x128xf32>, vector<16x128xf32> -> vector<16x128xf32>
    %14 = arith.maximumf %11, %13 : vector<16x128xf32>
    %15 = vector.extract_strided_slice %5 {offsets = [48, 0], sizes = [16, 64], strides = [1, 1]} : vector<64x64xf32> to vector<16x64xf32>
    %cst_11 = arith.constant dense<0.000000e+00> : vector<16x128xf32>
    %16 = tpu.matmul %15, %4, %cst_11 {dimension_numbers = #tpu.dot_dimension_numbers<[1], [0], [0], [1], [0, 0, 1, 1], [], []>} : vector<16x64xf32>, vector<64x128xf32>, vector<16x128xf32> -> vector<16x128xf32>
    %17 = arith.maximumf %14, %16 : vector<16x128xf32>
    %18 = vector.extract_strided_slice %17 {offsets = [0, 0], sizes = [16, 64], strides = [1, 1]} : vector<16x128xf32> to vector<16x64xf32>
    %19 = vector.extract_strided_slice %17 {offsets = [0, 64], sizes = [16, 64], strides = [1, 1]} : vector<16x128xf32> to vector<16x64xf32>
    %20 = tpu.concatenate %18, %19 in 0 : vector<16x64xf32>, vector<16x64xf32> -> vector<32x64xf32>
    %21 = vector.extract_strided_slice %6 {offsets = [0, 0], sizes = [64, 16], strides = [1, 1]} : vector<64x64xf32> to vector<64x16xf32>
    %cst_12 = arith.constant dense<0.000000e+00> : vector<32x16xf32>
    %22 = tpu.matmul %20, %21, %cst_12 {dimension_numbers = #tpu.dot_dimension_numbers<[1], [0], [0], [1], [0, 0, 1, 1], [], []>} : vector<32x64xf32>, vector<64x16xf32>, vector<32x16xf32> -> vector<32x16xf32>
    %23 = vector.extract_strided_slice %6 {offsets = [0, 16], sizes = [64, 16], strides = [1, 1]} : vector<64x64xf32> to vector<64x16xf32>
    %cst_13 = arith.constant dense<0.000000e+00> : vector<32x16xf32>
    %24 = tpu.matmul %20, %23, %cst_13 {dimension_numbers = #tpu.dot_dimension_numbers<[1], [0], [0], [1], [0, 0, 1, 1], [], []>} : vector<32x64xf32>, vector<64x16xf32>, vector<32x16xf32> -> vector<32x16xf32>
    %25 = arith.maximumf %22, %24 : vector<32x16xf32>
    %26 = vector.extract_strided_slice %6 {offsets = [0, 32], sizes = [64, 16], strides = [1, 1]} : vector<64x64xf32> to vector<64x16xf32>
    %cst_14 = arith.constant dense<0.000000e+00> : vector<32x16xf32>
    %27 = tpu.matmul %20, %26, %cst_14 {dimension_numbers = #tpu.dot_dimension_numbers<[1], [0], [0], [1], [0, 0, 1, 1], [], []>} : vector<32x64xf32>, vector<64x16xf32>, vector<32x16xf32> -> vector<32x16xf32>
    %28 = arith.maximumf %25, %27 : vector<32x16xf32>
    %29 = vector.extract_strided_slice %6 {offsets = [0, 48], sizes = [64, 16], strides = [1, 1]} : vector<64x64xf32> to vector<64x16xf32>
    %cst_15 = arith.constant dense<0.000000e+00> : vector<32x16xf32>
    %30 = tpu.matmul %20, %29, %cst_15 {dimension_numbers = #tpu.dot_dimension_numbers<[1], [0], [0], [1], [0, 0, 1, 1], [], []>} : vector<32x64xf32>, vector<64x16xf32>, vector<32x16xf32> -> vector<32x16xf32>
    %31 = arith.maximumf %28, %30 : vector<32x16xf32>
    %c128 = arith.constant 128 : index
    %c0_16 = arith.constant 0 : index
    %32 = vector.load %arg1[%c128, %c0_16] : memref<968x128xf32, #tpu.memory_space<vmem>>, vector<28x32xf32>
    %cst_17 = arith.constant dense<0.000000e+00> : vector<28x16xf32>
    %33 = tpu.matmul %32, %31, %cst_17 {dimension_numbers = #tpu.dot_dimension_numbers<[1], [0], [0], [1], [0, 0, 1, 1], [], []>} : vector<28x32xf32>, vector<32x16xf32>, vector<28x16xf32> -> vector<28x16xf32>
    %c160 = arith.constant 160 : index
    %c0_18 = arith.constant 0 : index
    %34 = vector.load %arg1[%c160, %c0_18] : memref<968x128xf32, #tpu.memory_space<vmem>>, vector<16x14xf32>
    %cst_19 = arith.constant dense<0.000000e+00> : vector<28x14xf32>
    %35 = tpu.matmul %33, %34, %cst_19 {dimension_numbers = #tpu.dot_dimension_numbers<[1], [0], [0], [1], [0, 0, 1, 1], [], []>} : vector<28x16xf32>, vector<16x14xf32>, vector<28x14xf32> -> vector<28x14xf32>
    %c176 = arith.constant 176 : index
    %c0_20 = arith.constant 0 : index
    %36 = vector.load %arg1[%c176, %c0_20] : memref<968x128xf32, #tpu.memory_space<vmem>>, vector<14x112xf32>
    %cst_21 = arith.constant dense<0.000000e+00> : vector<28x112xf32>
    %37 = tpu.matmul %35, %36, %cst_21 {dimension_numbers = #tpu.dot_dimension_numbers<[1], [0], [0], [1], [0, 0, 1, 1], [], []>} : vector<28x14xf32>, vector<14x112xf32>, vector<28x112xf32> -> vector<28x112xf32>
    %cst_22 = arith.constant 0.000000e+00 : f32
    %38 = vector.broadcast %cst_22 : f32 to vector<28x112xf32>
    %39 = arith.maximumf %37, %38 : vector<28x112xf32>
    %c192 = arith.constant 192 : index
    %c0_23 = arith.constant 0 : index
    %40 = vector.load %arg1[%c192, %c0_23] : memref<968x128xf32, #tpu.memory_space<vmem>>, vector<14x28xf32>
    %cst_24 = arith.constant dense<0.000000e+00> : vector<14x112xf32>
    %41 = tpu.matmul %40, %39, %cst_24 {dimension_numbers = #tpu.dot_dimension_numbers<[1], [0], [0], [1], [0, 0, 1, 1], [], []>} : vector<14x28xf32>, vector<28x112xf32>, vector<14x112xf32> -> vector<14x112xf32>
    %c208 = arith.constant 208 : index
    %c0_25 = arith.constant 0 : index
    %42 = vector.load %arg1[%c208, %c0_25] : memref<968x128xf32, #tpu.memory_space<vmem>>, vector<14x28xf32>
    %cst_26 = arith.constant dense<0.000000e+00> : vector<14x112xf32>
    %43 = tpu.matmul %42, %39, %cst_26 {dimension_numbers = #tpu.dot_dimension_numbers<[1], [0], [0], [1], [0, 0, 1, 1], [], []>} : vector<14x28xf32>, vector<28x112xf32>, vector<14x112xf32> -> vector<14x112xf32>
    %44 = arith.maximumf %41, %43 : vector<14x112xf32>
    %c224 = arith.constant 224 : index
    %c0_27 = arith.constant 0 : index
    %45 = vector.load %arg1[%c224, %c0_27] : memref<968x128xf32, #tpu.memory_space<vmem>>, vector<112x56xf32>
    %cst_28 = arith.constant dense<0.000000e+00> : vector<14x56xf32>
    %46 = tpu.matmul %44, %45, %cst_28 {dimension_numbers = #tpu.dot_dimension_numbers<[1], [0], [0], [1], [0, 0, 1, 1], [], []>} : vector<14x112xf32>, vector<112x56xf32>, vector<14x56xf32> -> vector<14x56xf32>
    %c336 = arith.constant 336 : index
    %c0_29 = arith.constant 0 : index
    %47 = vector.load %arg1[%c336, %c0_29] : memref<968x128xf32, #tpu.memory_space<vmem>>, vector<112x56xf32>
    %cst_30 = arith.constant dense<0.000000e+00> : vector<14x56xf32>
    %48 = tpu.matmul %44, %47, %cst_30 {dimension_numbers = #tpu.dot_dimension_numbers<[1], [0], [0], [1], [0, 0, 1, 1], [], []>} : vector<14x112xf32>, vector<112x56xf32>, vector<14x56xf32> -> vector<14x56xf32>
    %49 = arith.maximumf %46, %48 : vector<14x56xf32>
    %c448 = arith.constant 448 : index
    %c0_31 = arith.constant 0 : index
    %50 = vector.load %arg1[%c448, %c0_31] : memref<968x128xf32, #tpu.memory_space<vmem>>, vector<10x14xf32>
    %cst_32 = arith.constant dense<0.000000e+00> : vector<10x56xf32>
    %51 = tpu.matmul %50, %49, %cst_32 {dimension_numbers = #tpu.dot_dimension_numbers<[1], [0], [0], [1], [0, 0, 1, 1], [], []>} : vector<10x14xf32>, vector<14x56xf32>, vector<10x56xf32> -> vector<10x56xf32>
    %c464 = arith.constant 464 : index
    %c0_33 = arith.constant 0 : index
    %52 = vector.load %arg1[%c464, %c0_33] : memref<968x128xf32, #tpu.memory_space<vmem>>, vector<10x14xf32>
    %cst_34 = arith.constant dense<0.000000e+00> : vector<10x56xf32>
    %53 = tpu.matmul %52, %49, %cst_34 {dimension_numbers = #tpu.dot_dimension_numbers<[1], [0], [0], [1], [0, 0, 1, 1], [], []>} : vector<10x14xf32>, vector<14x56xf32>, vector<10x56xf32> -> vector<10x56xf32>
    %c480 = arith.constant 480 : index
    %c0_35 = arith.constant 0 : index
    %54 = vector.load %arg1[%c480, %c0_35] : memref<968x128xf32, #tpu.memory_space<vmem>>, vector<10x14xf32>
    %cst_36 = arith.constant dense<0.000000e+00> : vector<10x56xf32>
    %55 = tpu.matmul %54, %49, %cst_36 {dimension_numbers = #tpu.dot_dimension_numbers<[1], [0], [0], [1], [0, 0, 1, 1], [], []>} : vector<10x14xf32>, vector<14x56xf32>, vector<10x56xf32> -> vector<10x56xf32>
    %56 = tpu.concatenate %51, %53, %55 in 1 : vector<10x56xf32>, vector<10x56xf32>, vector<10x56xf32> -> vector<10x168xf32>
    %c496 = arith.constant 496 : index
    %c0_37 = arith.constant 0 : index
    %57 = vector.load %arg1[%c496, %c0_37] : memref<968x128xf32, #tpu.memory_space<vmem>>, vector<168x56xf32>
    %cst_38 = arith.constant dense<0.000000e+00> : vector<10x56xf32>
    %58 = tpu.matmul %56, %57, %cst_38 {dimension_numbers = #tpu.dot_dimension_numbers<[1], [0], [0], [1], [0, 0, 1, 1], [], []>} : vector<10x168xf32>, vector<168x56xf32>, vector<10x56xf32> -> vector<10x56xf32>
    %c664 = arith.constant 664 : index
    %c0_39 = arith.constant 0 : index
    %59 = vector.load %arg1[%c664, %c0_39] : memref<968x128xf32, #tpu.memory_space<vmem>>, vector<56x40xf32>
    %cst_40 = arith.constant dense<0.000000e+00> : vector<10x40xf32>
    %60 = tpu.matmul %58, %59, %cst_40 {dimension_numbers = #tpu.dot_dimension_numbers<[1], [0], [0], [1], [0, 0, 1, 1], [], []>} : vector<10x56xf32>, vector<56x40xf32>, vector<10x40xf32> -> vector<10x40xf32>
    %c720 = arith.constant 720 : index
    %c0_41 = arith.constant 0 : index
    %61 = vector.load %arg1[%c720, %c0_41] : memref<968x128xf32, #tpu.memory_space<vmem>>, vector<40x40xf32>
    %cst_42 = arith.constant dense<0.000000e+00> : vector<10x40xf32>
    %62 = tpu.matmul %60, %61, %cst_42 {dimension_numbers = #tpu.dot_dimension_numbers<[1], [0], [0], [1], [0, 0, 1, 1], [], []>} : vector<10x40xf32>, vector<40x40xf32>, vector<10x40xf32> -> vector<10x40xf32>
    %cst_43 = arith.constant 0.000000e+00 : f32
    %63 = vector.broadcast %cst_43 : f32 to vector<10x40xf32>
    %64 = arith.maximumf %62, %63 : vector<10x40xf32>
    %c760 = arith.constant 760 : index
    %c0_44 = arith.constant 0 : index
    %65 = vector.load %arg1[%c760, %c0_44] : memref<968x128xf32, #tpu.memory_space<vmem>>, vector<4x10xf32>
    %cst_45 = arith.constant dense<0.000000e+00> : vector<4x40xf32>
    %66 = tpu.matmul %65, %64, %cst_45 {dimension_numbers = #tpu.dot_dimension_numbers<[1], [0], [0], [1], [0, 0, 1, 1], [], []>} : vector<4x10xf32>, vector<10x40xf32>, vector<4x40xf32> -> vector<4x40xf32>
    %c768 = arith.constant 768 : index
    %c0_46 = arith.constant 0 : index
    %67 = vector.load %arg1[%c768, %c0_46] : memref<968x128xf32, #tpu.memory_space<vmem>>, vector<4x10xf32>
    %cst_47 = arith.constant dense<0.000000e+00> : vector<4x40xf32>
    %68 = tpu.matmul %67, %64, %cst_47 {dimension_numbers = #tpu.dot_dimension_numbers<[1], [0], [0], [1], [0, 0, 1, 1], [], []>} : vector<4x10xf32>, vector<10x40xf32>, vector<4x40xf32> -> vector<4x40xf32>
    %69 = arith.maximumf %66, %68 : vector<4x40xf32>
    %c776 = arith.constant 776 : index
    %c0_48 = arith.constant 0 : index
    %70 = vector.load %arg1[%c776, %c0_48] : memref<968x128xf32, #tpu.memory_space<vmem>>, vector<40x16xf32>
    %cst_49 = arith.constant dense<0.000000e+00> : vector<4x16xf32>
    %71 = tpu.matmul %69, %70, %cst_49 {dimension_numbers = #tpu.dot_dimension_numbers<[1], [0], [0], [1], [0, 0, 1, 1], [], []>} : vector<4x40xf32>, vector<40x16xf32>, vector<4x16xf32> -> vector<4x16xf32>
    %c816 = arith.constant 816 : index
    %c0_50 = arith.constant 0 : index
    %72 = vector.load %arg1[%c816, %c0_50] : memref<968x128xf32, #tpu.memory_space<vmem>>, vector<40x16xf32>
    %cst_51 = arith.constant dense<0.000000e+00> : vector<4x16xf32>
    %73 = tpu.matmul %69, %72, %cst_51 {dimension_numbers = #tpu.dot_dimension_numbers<[1], [0], [0], [1], [0, 0, 1, 1], [], []>} : vector<4x40xf32>, vector<40x16xf32>, vector<4x16xf32> -> vector<4x16xf32>
    %74 = arith.maximumf %71, %73 : vector<4x16xf32>
    %75 = vector.extract_strided_slice %74 {offsets = [0, 0], sizes = [1, 16], strides = [1, 1]} : vector<4x16xf32> to vector<1x16xf32>
    %76 = vector.extract_strided_slice %74 {offsets = [1, 0], sizes = [1, 16], strides = [1, 1]} : vector<4x16xf32> to vector<1x16xf32>
    %77 = tpu.concatenate %75, %76 in 1 : vector<1x16xf32>, vector<1x16xf32> -> vector<1x32xf32>
    %78 = vector.extract_strided_slice %74 {offsets = [2, 0], sizes = [1, 16], strides = [1, 1]} : vector<4x16xf32> to vector<1x16xf32>
    %79 = vector.extract_strided_slice %74 {offsets = [3, 0], sizes = [1, 16], strides = [1, 1]} : vector<4x16xf32> to vector<1x16xf32>
    %80 = tpu.concatenate %78, %79 in 1 : vector<1x16xf32>, vector<1x16xf32> -> vector<1x32xf32>
    %81 = tpu.concatenate %77, %80 in 0 : vector<1x32xf32>, vector<1x32xf32> -> vector<2x32xf32>
    %c856 = arith.constant 856 : index
    %c0_52 = arith.constant 0 : index
    %82 = vector.load %arg1[%c856, %c0_52] : memref<968x128xf32, #tpu.memory_space<vmem>>, vector<32x64xf32>
    %cst_53 = arith.constant dense<0.000000e+00> : vector<2x64xf32>
    %83 = tpu.matmul %81, %82, %cst_53 {dimension_numbers = #tpu.dot_dimension_numbers<[1], [0], [0], [1], [0, 0, 1, 1], [], []>} : vector<2x32xf32>, vector<32x64xf32>, vector<2x64xf32> -> vector<2x64xf32>
    %c888 = arith.constant 888 : index
    %c0_54 = arith.constant 0 : index
    %84 = vector.load %arg1[%c888, %c0_54] : memref<968x128xf32, #tpu.memory_space<vmem>>, vector<1x64xf32>
    %85 = vector.broadcast %84 : vector<1x64xf32> to vector<2x64xf32>
    %86 = arith.addf %83, %85 : vector<2x64xf32>
    %cst_55 = arith.constant 0.000000e+00 : f32
    %87 = vector.broadcast %cst_55 : f32 to vector<2x64xf32>
    %88 = arith.maximumf %86, %87 : vector<2x64xf32>
    %c896 = arith.constant 896 : index
    %c0_56 = arith.constant 0 : index
    %89 = vector.load %arg1[%c896, %c0_56] : memref<968x128xf32, #tpu.memory_space<vmem>>, vector<64x10xf32>
    %cst_57 = arith.constant dense<0.000000e+00> : vector<2x10xf32>
    %90 = tpu.matmul %88, %89, %cst_57 {dimension_numbers = #tpu.dot_dimension_numbers<[1], [0], [0], [1], [0, 0, 1, 1], [], []>} : vector<2x64xf32>, vector<64x10xf32>, vector<2x10xf32> -> vector<2x10xf32>
    %c960 = arith.constant 960 : index
    %c0_58 = arith.constant 0 : index
    %91 = vector.load %arg1[%c960, %c0_58] : memref<968x128xf32, #tpu.memory_space<vmem>>, vector<1x10xf32>
    %92 = vector.broadcast %91 : vector<1x10xf32> to vector<2x10xf32>
    %93 = arith.addf %90, %92 : vector<2x10xf32>
    %cst_59 = arith.constant dense<0xFF800000> : vector<2xf32>
    %94 = vector.multi_reduction <maximumf>, %93, %cst_59 [1] : vector<2x10xf32> to vector<2xf32>
    %95 = vector.shape_cast %94 : vector<2xf32> to vector<2x1xf32>
    %96 = vector.broadcast %95 : vector<2x1xf32> to vector<2x10xf32>
    %97 = arith.subf %93, %96 : vector<2x10xf32>
    %98 = math.exp %97 : vector<2x10xf32>
    %cst_60 = arith.constant dense<0.000000e+00> : vector<2xf32>
    %99 = vector.multi_reduction <add>, %98, %cst_60 [1] : vector<2x10xf32> to vector<2xf32>
    %100 = vector.shape_cast %99 : vector<2xf32> to vector<2x1xf32>
    %101 = tpu.reciprocal %100 {approx = true} : vector<2x1xf32> -> vector<2x1xf32>
    %c0_61 = arith.constant 0 : index
    %c0_62 = arith.constant 0 : index
    %102 = vector.load %arg2[%c0_61, %c0_62] : memref<2x10xf32, #tpu.memory_space<vmem>>, vector<2x10xf32>
    tpu.vector_store %arg2[%c0_61, %c0_62], %93 {strides = array<i32>} : memref<2x10xf32, #tpu.memory_space<vmem>>, vector<2x10xf32>,
    %103 = vector.broadcast %101 : vector<2x1xf32> to vector<2x10xf32>
    %104 = arith.mulf %98, %103 : vector<2x10xf32>
    %c0_63 = arith.constant 0 : index
    %c0_64 = arith.constant 0 : index
    %105 = vector.load %arg3[%c0_63, %c0_64] : memref<2x10xf32, #tpu.memory_space<vmem>>, vector<2x10xf32>
    tpu.vector_store %arg3[%c0_63, %c0_64], %104 {strides = array<i32>} : memref<2x10xf32, #tpu.memory_space<vmem>>, vector<2x10xf32>,
    return
  }
}

</mosaic_0001>

<bundles_post_ra>
// kernel: forward.1
= control target key start
LH: loop header
LB: loop body
LE: loop exit
PB: predicated region body
PF: predicated region fallthrough
CT: control target
= control target key end

     0   :  { %9 = vsyncpa [#allocation3], 0  ;;  %s4149_s0 = inlined_call_operand.hbm [shape: f32[2,1,64,64], index: 0, kind: input, shape index: {}]   ;;  %s4150_s1 = inlined_call_operand.hbm [shape: f32[968,128], index: 1, kind: input, shape index: {}]   ;;  %s4151_s2 = inlined_call_operand.hbm [shape: f32[2,10], index: 2, kind: output, shape index: {0}]   ;;  %s4152_s3 = inlined_call_operand.hbm [shape: f32[2,10], index: 3, kind: output, shape index: {1}]  }
   0x1   :  { %10 = vsyncpa [#allocation6], 0 }
   0x2   :  { %11 = vsyncpa [#allocation4], 0 }
   0x3   :  { %12 = vsyncpa [#allocation9], 0  ;;  %s3856_s12 = smov [#allocation2]   ;;  %s3760_s16 = scalar_lea.hbm %s4149_s0, 2048 }
   0x4   :  { %s18_s13 = sshll.u32 %s3856_s12, 4  ;;  %p3761_p0 = scmp.ne.s32.totalorder %s4149_s0, %s3760_s16  ;;  %s19_s13 = int_to_ptr.vmem [resolvable:$true] %s18_s13 }
   0x5   :  { %p3764_p1 = scmp.lt.u32.totalorder %s3760_s16, %s4149_s0 }
   0x7   :  { %p3766_p2 = pnand %p3764_p1, %p3761_p0 }
   0x9   :  { %3769 = shalt.err (!%p3766_p2)
}
   0xa   :  { %s3770_s21 = scalar_lea.vmem %s19_s13, 2048  ;;  %p3775_p4 = scmp.lt.s32.totalorder %s19_s13, %s19_s13 }
   0xb   :  { %p3771_p3 = scmp.ne.s32.totalorder %s19_s13, %s3770_s21  ;;  %p3776_p5 = scmp.lt.s32.totalorder %s3770_s21, %s3770_s21 }
   0xd   :  { %p3777_p6 = por %p3776_p5, %p3775_p4 }
   0xf   :  { %p3778_p7 = pnand %p3777_p6, %p3771_p3 }
  0x11   :  { %3781 = shalt.err (!%p3778_p7)
}
  0x12   :  { %s3857_s22 = smov 128   ;;  %s3858_s23 = smov 8  }
  0x13   :  { %24 = dma.hbm_to_vmem [thread:$0]  %s4149_s0, 2048, %s19_s13, [#allocation3], %s3857_s22, %s3857_s22, %s3858_s23  }
  0x14   :  { %s3859_s26 = smov [#allocation5]   ;;  %s3782_s30 = scalar_lea.hbm %s4150_s1, 15488 }
  0x15   :  { %s30_s27 = sshll.u32 %s3859_s26, 4  ;;  %p3783_p8 = scmp.ne.s32.totalorder %s4150_s1, %s3782_s30  ;;  %s31_s27 = int_to_ptr.vmem [resolvable:$true] %s30_s27 }
  0x16   :  { %p3786_p9 = scmp.lt.u32.totalorder %s3782_s30, %s4150_s1 }
  0x18   :  { %p3788_p10 = pnand %p3786_p9, %p3783_p8 }
  0x1a   :  { %3791 = shalt.err (!%p3788_p10)
}
  0x1b   :  { %s3792_s8 = scalar_lea.vmem %s31_s27, 15488  ;;  %p3797_p12 = scmp.lt.s32.totalorder %s31_s27, %s31_s27 }
  0x1c   :  { %p3793_p11 = scmp.ne.s32.totalorder %s31_s27, %s3792_s8  ;;  %p3798_p13 = scmp.lt.s32.totalorder %s3792_s8, %s3792_s8 }
  0x1e   :  { %p3799_p0 = por %p3798_p13, %p3797_p12 }
  0x20   :  { %p3800_p1 = pnand %p3799_p0, %p3793_p11 }
  0x22   :  { %3803 = shalt.err (!%p3800_p1)
}
  0x23   :  { %36 = dma.hbm_to_vmem [thread:$0]  %s4150_s1, 15488, %s31_s27, [#allocation6], %s3857_s22, %s3857_s22, %s3858_s23  }
  0x24   :  { %3848 = dma.done.wait [#allocation3], 2048  }
  0x25   :  { %3849 = vsyncadd [#allocation3], 4294965248 }
  0x26   :  { %3850 = dma.done.wait [#allocation6], 15488  }
  0x27   :  { %3851 = vsyncadd [#allocation6], 4294951808  ;;  %v52_v0 = vld [vmem:[#allocation2 + $0x40] sm:$0xff]  ;;  %v53_v1 = vld [vmem:[#allocation2 + $0x48] sm:$0xff]  ;;  %s3860_s10 = smov 64   ;;  %vm92_vm0 = vcmask 523264  }
  0x28   :  { %v54_v2 = vld [vmem:[#allocation2 + $0x50] sm:$0xff]  ;;  %v3676_v3 = vpack.i.bf16 %v53_v1, %v52_v0  ;;  %v55_v4 = vld [vmem:[#allocation2 + $0x58] sm:$0xff]  ;;  %v56_v5 = vld [vmem:[#allocation2 + $0x60] sm:$0xff]  ;;  %s3861_s1 = smov 112   ;;  %s3862_s11 = smov 96   ;;  %vm897_vm1 = vcmask 261120  }
  0x29   :  { %v57_v6 = vld [vmem:[#allocation2 + $0x68] sm:$0xff]  ;;  %v58_v8 = vld [vmem:[#allocation2 + $0x70] sm:$0xff]  ;;  %v59_v9 = vld [vmem:[#allocation2 + $0x78] sm:$0xff]  ;;  %v3681_v10 = vpack.i.bf16 %v55_v4, %v54_v2  ;;  %s3863_s12 = smov 80   ;;  %vm1110_vm2 = vcmask 1045504   ;;  %vm3864_vm3 = vmmov 1  }
  0x2a   :  { %v3686_v7 = vpack.i.bf16 %v57_v6, %v56_v5  ;;  %3677 = vrot.lane.b32.xlu0 %v3676_v3, %s3860_s10  ;;  %v3691_v11 = vpack.i.bf16 %v59_v9, %v58_v8  ;;  %v101_v12 = vld [vmem:[#allocation5] sm:$0xff]  ;;  %v103_v13 = vld [vmem:[#allocation5 + $0x10] sm:$0xff]  ;;  %v3924_v15 = vld [vmem:[#allocation5 + $0x48] sm:$0xff]  ;;  %vm997_vm5 = vcmask 130048   ;;  %vm1097_vm6 = vcmask 113664   ;;  %s3867_s13 = smov 56  }
  0x2b   :  { %2945 = vmatprep.mubr.msk.f32.mxu0 %vm92_vm0, %v101_v12  ;;  %2964 = vmatprep.mubr.msk.f32.mxu1 %vm92_vm0, %v103_v13  ;;  %v3922_v14 = vld [vmem:[#allocation5 + $0x40] sm:$0xff]  ;;  %v3930_v17 = vld [vmem:[#allocation5 + $0x50] sm:$0xff]  ;;  %v3932_v18 = vld [vmem:[#allocation5 + $0x58] sm:$0xff]  ;;  %vm1205_vm7 = vcmask 228352   ;;  %vm1212_vm8 = vcmask 1043456   ;;  %vm1390_vm10 = vcmask 916480  }
  0x2c   :  { %3687 = vrot.lane.b32.xlu1 %v3686_v7, %s3860_s10  ;;  %v3928_v16 = vpack.i.bf16 %v3924_v15, %v3922_v14  ;;  %v3934_v19 = vld [vmem:[#allocation5 + $0x60] sm:$0xff]  ;;  %v3938_v20 = vpack.i.bf16 %v3932_v18, %v3930_v17  ;;  %v3940_v21 = vld [vmem:[#allocation5 + $0x68] sm:$0xff]  ;;  %v3942_v22 = vld [vmem:[#allocation5 + $0x70] sm:$0xff]  ;;  %v3396_v2 = vpack.c.bf16 %v3924_v15, %v3922_v14  ;;  %v3400_v7 = vpack.c.bf16 %v3932_v18, %v3930_v17  ;;  %s3869_s14 = smov 16   ;;  %s3870_s15 = smov [#allocation7]  }
  0x2d   :  { %v3944_v23 = vld [vmem:[#allocation5 + $0x78] sm:$0xff]  ;;  %v3950_v24 = vpack.i.bf16 %v3940_v21, %v3934_v19  ;;  %v43_v27 = vld [vmem:[#allocation2] sm:$0xff]  ;;  %v44_v28 = vld [vmem:[#allocation2 + $0x8] sm:$0xff]  ;;  %vm1857_vm11 = vcmask 326656   ;;  %vm1831_vm12 = vcmask 457728   ;;  %vm3868_vm13 = vmmov 0  }
  0x2e   :  { %3682 = vrot.lane.b32.xlu0 %v3681_v10, %s3860_s10  ;;  %v3956_v25 = vpack.i.bf16 %v3944_v23, %v3942_v22  ;;  %v47_v34 = vld [vmem:[#allocation2 + $0x20] sm:$0xff]  ;;  %v48_v35 = vld [vmem:[#allocation2 + $0x28] sm:$0xff]  ;;  %v45_v40 = vld [vmem:[#allocation2 + $0x10] sm:$0xff]  ;;  %vm2118_vm14 = vcmask 1041408   ;;  %s2621_s16 = sshll.u32 %s3870_s15, 4  ;;  %s2622_s16 = int_to_ptr.vmem [resolvable:$true] %s2621_s16 }
  0x2f   :  { %v46_v41 = vld [vmem:[#allocation2 + $0x18] sm:$0xff]  ;;  %v49_v49 = vld [vmem:[#allocation2 + $0x30] sm:$0xff]  ;;  %v102_v58 = vld [vmem:[#allocation5 + $0x8] sm:$0xff]  ;;  %s3804_s17 = scalar_lea.vmem %s2622_s16, 32  ;;  %p3809_p3 = scmp.lt.s32.totalorder %s2622_s16, %s2622_s16 }
  0x30   :  { %3692 = vrot.lane.b32.xlu1 %v3691_v11, %s3860_s10  ;;  %v50_v50 = vld [vmem:[#allocation2 + $0x38] sm:$0xff]  ;;  %v105_v60 = vld [vmem:[#allocation5 + $0x20] sm:$0xff]  ;;  %v107_v61 = vld [vmem:[#allocation5 + $0x30] sm:$0xff]  ;;  %v3404_v11 = vpack.c.bf16 %v3940_v21, %v3934_v19  ;;  %v3408_v19 = vpack.c.bf16 %v3944_v23, %v3942_v22  ;;  %p3805_p2 = scmp.ne.s32.totalorder %s2622_s16, %s3804_s17  ;;  %p3810_p4 = scmp.lt.s32.totalorder %s3804_s17, %s3804_s17 }
  0x31   :  { %v104_v59 = vld [vmem:[#allocation5 + $0x18] sm:$0xff]  ;;  %v106_v62 = vld [vmem:[#allocation5 + $0x28] sm:$0xff]  ;;  %vm4023_vm4 = vmpackc.low %vm1110_vm2, %vm3864_vm3  ;;  %vm2114_vm2 = vcmask 80896  }
  0x32   :  { %3697 = vrot.lane.b32.xlu0 %v3928_v16, %s3861_s1  ;;  %v108_v63 = vld [vmem:[#allocation5 + $0x38] sm:$0xff]  ;;  %vm3483_vm9 = vmpackc.low %vm1212_vm8, %vm3864_vm3  ;;  %p3811_p5 = por %p3810_p4, %p3809_p3 }
  0x33   :  { %vm3624_vm15 = vmpackc.low %vm2118_vm14, %vm3864_vm3  ;;  %vm2430_vm3 = vcmask 1040384  }
  0x34   :  { %3702 = vrot.lane.b32.xlu1 %v3938_v20, %s3861_s1  ;;  %p3812_p6 = pnand %p3811_p5, %p3805_p2 }
  0x36   :  { %3707 = vrot.lane.b32.xlu0 %v3950_v24, %s3861_s1 }
  0x38   :  { %3712 = vrot.lane.b32.xlu1 %v3956_v25, %s3861_s1 }
  0x3a   :  { %3717 = vrot.lane.b32.xlu0 %v3928_v16, %s3862_s11 }
  0x3c   :  { %3722 = vrot.lane.b32.xlu1 %v3928_v16, %s3863_s12 }
  0x3e   :  { %3727 = vrot.lane.b32.xlu0 %v3938_v20, %s3862_s11 }
  0x40   :  { %3732 = vrot.lane.b32.xlu1 %v3938_v20, %s3863_s12 }
  0x42   :  { %3737 = vrot.lane.b32.xlu0 %v3950_v24, %s3862_s11 }
  0x44   :  { %3742 = vrot.lane.b32.xlu1 %v3950_v24, %s3863_s12 }
  0x46   :  { %3747 = vrot.lane.b32.xlu0 %v3956_v25, %s3862_s11 }
  0x9c   :  { %v3678_v26 = vpop.permute.xlu0 %3677 }
  0x9d   :  { %v3680_v29 = vunpack.i.h.bf16 %v3678_v26  ;;  %v3679_v30 = vunpack.i.l.bf16 %v3678_v26 }
  0x9e   :  { %v3688_v31 = vpop.permute.xlu1 %3687 }
  0x9f   :  { %v3690_v32 = vunpack.i.h.bf16 %v3688_v31  ;;  %v3689_v33 = vunpack.i.l.bf16 %v3688_v31  ;;  %v93_v36 = vsel %vm92_vm0, %v43_v27, %v3679_v30  ;;  %v94_v37 = vsel %vm92_vm0, %v44_v28, %v3680_v29 }
  0xa0   :  { %v3332_v38 = vpack.c.bf16 %v94_v37, %v93_v36  ;;  %v3683_v39 = vpop.permute.xlu0 %3682 }
  0xa1   :  { %v3685_v42 = vunpack.i.h.bf16 %v3683_v39  ;;  %v3684_v43 = vunpack.i.l.bf16 %v3683_v39  ;;  %v97_v44 = vsel %vm92_vm0, %v47_v34, %v3689_v33  ;;  %v98_v45 = vsel %vm92_vm0, %v48_v35, %v3690_v32 }
  0xa2   :  { %v3693_v46 = vpop.permute.xlu1 %3692  ;;  %3333 = vmatprep.subr.bf16.mxu0 %v3332_v38  ;;  %3349 = vmatprep.subr.bf16.mxu1 %v3332_v38  ;;  %v3340_v54 = vpack.c.bf16 %v98_v45, %v97_v44 }
  0xa3   :  { %v3695_v47 = vunpack.i.h.bf16 %v3693_v46  ;;  %v3694_v48 = vunpack.i.l.bf16 %v3693_v46  ;;  %v95_v51 = vsel %vm92_vm0, %v45_v40, %v3684_v43  ;;  %v96_v52 = vsel %vm92_vm0, %v46_v41, %v3685_v42  ;;  %3335 = vmatpush3.bf16.msra.mxu0 %v3332_v38  ;;  %3351 = vmatpush3.bf16.msra.mxu1 %v3332_v38 }
  0xa4   :  { %v3336_v53 = vpack.c.bf16 %v96_v52, %v95_v51  ;;  %v3698_v0 = vpop.permute.xlu0 %3697 }
  0xa5   :  { %v99_v55 = vsel %vm92_vm0, %v49_v49, %v3694_v48  ;;  %v100_v56 = vsel %vm92_vm0, %v50_v50, %v3695_v47  ;;  %v3700_v3 = vunpack.i.h.bf16 %v3698_v0  ;;  %v3699_v4 = vunpack.i.l.bf16 %v3698_v0 }
  0xa6   :  { %3337 = vmatprep.subr.bf16.mxu0 %v3336_v53  ;;  %3353 = vmatprep.subr.bf16.mxu1 %v3336_v53  ;;  %v3344_v57 = vpack.c.bf16 %v100_v56, %v99_v55  ;;  %v3703_v1 = vpop.permute.xlu1 %3702 }
  0xa7   :  { %3339 = vmatpush3.bf16.msra.mxu0 %v3336_v53  ;;  %3355 = vmatpush3.bf16.msra.mxu1 %v3336_v53  ;;  %v3705_v5 = vunpack.i.h.bf16 %v3703_v1  ;;  %v3704_v6 = vunpack.i.l.bf16 %v3703_v1  ;;  %v3412_v8 = vpack.c.bf16 %v3700_v3, %v3699_v4 }
  0xa8   :  { %3341 = vmatprep.subr.bf16.mxu0 %v3340_v54  ;;  %3357 = vmatprep.subr.bf16.mxu1 %v3340_v54  ;;  %v3708_v10 = vpop.permute.xlu0 %3707 }
  0xa9   :  { %v3416_v9 = vpack.c.bf16 %v3705_v5, %v3704_v6  ;;  %v3710_v12 = vunpack.i.h.bf16 %v3708_v10  ;;  %v3709_v13 = vunpack.i.l.bf16 %v3708_v10  ;;  %v893_v10 = vld [vmem:[#allocation5 + $0x80] sm:$0xff] }
  0xaa   :  { %v3713_v14 = vpop.permute.xlu1 %3712 }
  0xab   :  { %3343 = vmatpush3.bf16.msra.mxu0 %v3340_v54  ;;  %3359 = vmatpush3.bf16.msra.mxu1 %v3340_v54  ;;  %v3420_v15 = vpack.c.bf16 %v3710_v12, %v3709_v13  ;;  %v3715_v16 = vunpack.i.h.bf16 %v3713_v14  ;;  %v3714_v17 = vunpack.i.l.bf16 %v3713_v14 }
  0xac   :  { %3345 = vmatprep.subr.bf16.mxu0 %v3344_v57  ;;  %3361 = vmatprep.subr.bf16.mxu1 %v3344_v57  ;;  %v3718_v20 = vpop.permute.xlu0 %3717 }
  0xad   :  { %v3424_v18 = vpack.c.bf16 %v3715_v16, %v3714_v17  ;;  %v3720_v21 = vunpack.i.h.bf16 %v3718_v20  ;;  %v3719_v26 = vunpack.i.l.bf16 %v3718_v20 }
  0xae   :  { %v3723_v27 = vpop.permute.xlu1 %3722 }
  0xaf   :  { %3347 = vmatpush3.bf16.msra.mxu0 %v3344_v57  ;;  %3363 = vmatpush3.bf16.msra.mxu1 %v3344_v57  ;;  %v3725_v28 = vunpack.i.h.bf16 %v3723_v27  ;;  %v3724_v29 = vunpack.i.l.bf16 %v3723_v27  ;;  %v3428_v30 = vpack.c.bf16 %v3720_v21, %v3719_v26 }
  0xb0   :  { %3365 = vmatprep.subr.bf16.mxu0 %v3332_v38  ;;  %3381 = vmatprep.subr.bf16.mxu1 %v3332_v38  ;;  %v3728_v23 = vpop.permute.xlu0 %3727 }
  0xb1   :  { %v3444_v31 = vpack.c.bf16 %v3725_v28, %v3724_v29  ;;  %v3730_v42 = vunpack.i.h.bf16 %v3728_v23  ;;  %v3729_v43 = vunpack.i.l.bf16 %v3728_v23  ;;  %v996_v23 = vld [vmem:[#allocation5 + $0xa8] sm:$0xff] }
  0xb2   :  { %2946 = vmatmul.mubr.msk.f32.vlgmr.msra.gmra.mrb[0].mxu0 %vm92_vm0, %v102_v58  ;;  %2965 = vmatmul.mubr.msk.f32.vlgmr.msra.gmra.mrb[0].mxu1 %vm92_vm0, %v104_v59  ;;  %v3733_v36 = vpop.permute.xlu1 %3732 }
  0xb3   :  { %3367 = vmatpush3.bf16.msra.mxu0 %v3332_v38  ;;  %3383 = vmatpush3.bf16.msra.mxu1 %v3332_v38  ;;  %v3735_v45 = vunpack.i.h.bf16 %v3733_v36  ;;  %v3734_v46 = vunpack.i.l.bf16 %v3733_v36  ;;  %v3432_v51 = vpack.c.bf16 %v3730_v42, %v3729_v43  ;;  %v1095_v42 = vld [vmem:[#allocation5 + $0xb0] sm:$0xff]  ;;  %v1096_v43 = vld [vmem:[#allocation5 + $0xb8] sm:$0x3f] }
  0xb4   :  { %3369 = vmatprep.subr.bf16.mxu0 %v3336_v53  ;;  %3385 = vmatprep.subr.bf16.mxu1 %v3336_v53  ;;  %v3738_v47 = vpop.permute.xlu0 %3737 }
  0xb5   :  { %2983 = vmatprep.mubr.msk.f32.mxu0 %vm92_vm0, %v105_v60  ;;  %3002 = vmatprep.mubr.msk.f32.mxu1 %vm92_vm0, %v107_v61  ;;  %v3740_v52 = vunpack.i.h.bf16 %v3738_v47 }
  0xb6   :  { %v3743_v49 = vpop.permute.xlu1 %3742 }
  0xb7   :  { %3371 = vmatpush3.bf16.msra.mxu0 %v3336_v53  ;;  %3387 = vmatpush3.bf16.msra.mxu1 %v3336_v53  ;;  %v3739_v53 = vunpack.i.l.bf16 %v3738_v47  ;;  %v3745_v55 = vunpack.i.h.bf16 %v3743_v49  ;;  %v3744_v56 = vunpack.i.l.bf16 %v3743_v49 }
  0xb8   :  { %3373 = vmatprep.subr.bf16.mxu0 %v3340_v54  ;;  %3389 = vmatprep.subr.bf16.mxu1 %v3340_v54 }
  0xb9   :  { %v3436_v58 = vpack.c.bf16 %v3740_v52, %v3739_v53  ;;  %v3452_v61 = vpack.c.bf16 %v3745_v55, %v3744_v56  ;;  %v1291_v55 = vld [vmem:[#allocation5 + $0xd0] sm:$0xff] }
  0xbb   :  { %3375 = vmatpush3.bf16.msra.mxu0 %v3340_v54  ;;  %3391 = vmatpush3.bf16.msra.mxu1 %v3340_v54  ;;  %v3448_v54 = vpack.c.bf16 %v3735_v45, %v3734_v46  ;;  %v1841_v45 = vld [vmem:[#allocation5 + $0x218] sm:$0xff] }
  0xbc   :  { %3377 = vmatprep.subr.bf16.mxu0 %v3344_v57  ;;  %3393 = vmatprep.subr.bf16.mxu1 %v3344_v57 }
  0xbf   :  { %3379 = vmatpush3.bf16.msra.mxu0 %v3344_v57  ;;  %3395 = vmatpush3.bf16.msra.mxu1 %v3344_v57  ;;  %v3748_v57 = vpop.permute.xlu0 %3747 }
  0xc0   :  { %3397 = vmatprep.subr.bf16.mxu0 %v3396_v2  ;;  %3413 = vmatprep.subr.bf16.mxu1 %v3412_v8  ;;  %v3750_v59 = vunpack.i.h.bf16 %v3748_v57  ;;  %v3749_v60 = vunpack.i.l.bf16 %v3748_v57 }
  0xc2   :  { %2984 = vmatmul.mubr.msk.f32.vlgmr.msra.gmra.mrb[2].mxu0 %vm92_vm0, %v106_v62  ;;  %3003 = vmatmul.mubr.msk.f32.vlgmr.msra.gmra.mrb[2].mxu1 %vm92_vm0, %v108_v63  ;;  %v3440_v62 = vpack.c.bf16 %v3750_v59, %v3749_v60 }
  0xc3   :  { %3399 = vmatpush3.bf16.msra.mxu0 %v3396_v2  ;;  %3415 = vmatpush3.bf16.msra.mxu1 %v3412_v8 }
  0xc4   :  { %3401 = vmatprep.subr.bf16.mxu0 %v3400_v7  ;;  %3417 = vmatprep.subr.bf16.mxu1 %v3416_v9 }
  0xc7   :  { %3403 = vmatpush3.bf16.msra.mxu0 %v3400_v7  ;;  %3419 = vmatpush3.bf16.msra.mxu1 %v3416_v9 }
  0xc8   :  { %3405 = vmatprep.subr.bf16.mxu0 %v3404_v11  ;;  %3421 = vmatprep.subr.bf16.mxu1 %v3420_v15 }
  0xcb   :  { %3407 = vmatpush3.bf16.msra.mxu0 %v3404_v11  ;;  %3423 = vmatpush3.bf16.msra.mxu1 %v3420_v15 }
  0xcc   :  { %3425 = vmatprep.subr.bf16.mxu1 %v3424_v18  ;;  %3409 = vmatprep.subr.bf16.mxu0 %v3408_v19 }
  0xcf   :  { %3411 = vmatpush3.bf16.msra.mxu0 %v3408_v19  ;;  %3427 = vmatpush3.bf16.msra.mxu1 %v3424_v18 }
  0xd0   :  { %3429 = vmatprep.subr.bf16.mxu0 %v3428_v30  ;;  %3445 = vmatprep.subr.bf16.mxu1 %v3444_v31 }
 0x185   :  { %v2947_v24 = vpop.f32.mrb[0].mxu0  ;;  %v2966_v32 = vpop.f32.mrb[0].mxu1 }
 0x186   :  { %v280_v33 = vmax.f32 %v2947_v24, %v2966_v32  ;;  %v189_v34 = vpop.f32.mrb[1].mxu0  ;;  %v270_v35 = vpop.f32.mrb[1].mxu1 }
 0x187   :  { %v279_v22 = vmax.f32 %v189_v34, %v270_v35 }
 0x195   :  { %v2985_v37 = vpop.f32.mrb[2].mxu0  ;;  %v3004_v38 = vpop.f32.mrb[2].mxu1 }
 0x196   :  { %v363_v39 = vmax.f32 %v280_v33, %v2985_v37  ;;  %v353_v40 = vpop.f32.mrb[3].mxu0  ;;  %v436_v41 = vpop.f32.mrb[3].mxu1 }
 0x197   :  { %v362_v44 = vmax.f32 %v279_v22, %v353_v40  ;;  %v995_v22 = vld [vmem:[#allocation5 + $0xa0] sm:$0xff]  ;;  %v895_v40 = vld [vmem:[#allocation5 + $0x90] sm:$0xff] }
 0x198   :  { %v446_v48 = vmax.f32 %v363_v39, %v3004_v38  ;;  %v3468_v38 = vpack.c.bf16 %v996_v23, %v995_v22  ;;  %v894_v39 = vld [vmem:[#allocation5 + $0x88] sm:$0xff]  ;;  %v1386_v22 = vld [vmem:[#allocation5 + $0x130] sm:$0xff]  ;;  %v1387_v23 = vld [vmem:[#allocation5 + $0x138] sm:$0xff] }
 0x199   :  { %v445_v50 = vmax.f32 %v362_v44, %v436_v41  ;;  %v896_v41 = vld [vmem:[#allocation5 + $0x98] sm:$0xf]  ;;  %v3472_v44 = vpack.c.bf16 %v1096_v43, %v1095_v42  ;;  %v1484_v42 = vld [vmem:[#allocation5 + $0x1b0] sm:$0xff] }
 0x19a   :  { %451 = vrot.lane.b32.xlu0 %v446_v48, %s3860_s10 }
 0x19b   :  { %449 = vrot.lane.b32.xlu1 %v445_v50, %s3860_s10  ;;  %3021 = vmatprep.mubr.msk.f32.mxu0 %vm92_vm0, %v445_v50 }
 0x19c   :  { %3043 = vmatprep.mubr.msk.f32.mxu1 %vm92_vm0, %v445_v50  ;;  %3022 = vmatmul.mubr.msk.f32.vlgmr.msra.gmra.mrb[4].mxu0 %vm92_vm0, %v446_v48 }
 0x19d   :  { %3044 = vmatmul.mubr.msk.f32.vlgmr.msra.gmra.mrb[4].mxu1 %vm92_vm0, %v446_v48  ;;  %3431 = vmatpush3.bf16.msra.mxu0 %v3428_v30 }
 0x19e   :  { %3447 = vmatpush3.bf16.msra.mxu1 %v3444_v31  ;;  %3433 = vmatprep.subr.bf16.mxu0 %v3432_v51 }
 0x19f   :  { %3752 = vrot.lane.b32.xlu1 %v3956_v25, %s3863_s12  ;;  %3449 = vmatprep.subr.bf16.mxu1 %v3448_v54 }
 0x1a1   :  { %3435 = vmatpush3.bf16.msra.mxu0 %v3432_v51 }
 0x1a2   :  { %3451 = vmatpush3.bf16.msra.mxu1 %v3448_v54  ;;  %3437 = vmatprep.subr.bf16.mxu0 %v3436_v58  ;;  %v1203_v54 = vld [vmem:[#allocation5 + $0xc0] sm:$0xff] }
 0x1a3   :  { %3453 = vmatprep.subr.bf16.mxu1 %v3452_v61 }
 0x1a5   :  { %3439 = vmatpush3.bf16.msra.mxu0 %v3436_v58 }
 0x1a6   :  { %3455 = vmatpush3.bf16.msra.mxu1 %v3452_v61  ;;  %3441 = vmatprep.subr.bf16.mxu0 %v3440_v62 }
 0x1a9   :  { %3443 = vmatpush3.bf16.msra.mxu0 %v3440_v62  ;;  %v1376_v62 = vld [vmem:[#allocation5 + $0xe0] sm:$0xff] }
 0x20c   :  { %v452_v0 = vpop.permute.xlu0 %451 }
 0x20d   :  { %v450_v63 = vpop.permute.xlu1 %449 }
 0x20e   :  { %3024 = vmatprep.mubr.msk.f32.mxu0 %vm92_vm0, %v450_v63  ;;  %3046 = vmatprep.mubr.msk.f32.mxu1 %vm92_vm0, %v450_v63 }
 0x20f   :  { %3025 = vmatmul.mubr.msk.f32.gmra.mrb[6].mxu0 %vm92_vm0, %v452_v0  ;;  %3047 = vmatmul.mubr.msk.f32.gmra.mrb[6].mxu1 %vm92_vm0, %v452_v0 }
 0x210   :  { %3065 = vmatprep.mubr.msk.f32.mxu0 %vm92_vm0, %v445_v50  ;;  %3087 = vmatprep.mubr.msk.f32.mxu1 %vm92_vm0, %v445_v50 }
 0x211   :  { %v3753_v25 = vpop.permute.xlu1 %3752 }
 0x212   :  { %v3755_v1 = vunpack.i.h.bf16 %v3753_v25  ;;  %v3754_v2 = vunpack.i.l.bf16 %v3753_v25  ;;  %v1377_v25 = vld [vmem:[#allocation5 + $0xe8] sm:$0xff] }
 0x213   :  { %3066 = vmatmul.mubr.msk.f32.vlgmr.msra.gmra.mrb[8].mxu0 %vm92_vm0, %v446_v48 }
 0x214   :  { %v3456_v3 = vpack.c.bf16 %v3755_v1, %v3754_v2  ;;  %3068 = vmatprep.mubr.msk.f32.mxu0 %vm92_vm0, %v450_v63  ;;  %v1472_v1 = vld [vmem:[#allocation5 + $0x150] sm:$0xff]  ;;  %v1473_v2 = vld [vmem:[#allocation5 + $0x158] sm:$0xff] }
 0x216   :  { %3457 = vmatprep.subr.bf16.mxu1 %v3456_v3 }
 0x217   :  { %3069 = vmatmul.mubr.msk.f32.gmra.mrb[10].mxu0 %vm92_vm0, %v452_v0  ;;  %3459 = vmatpush3.bf16.msra.mxu1 %v3456_v3 }
 0x218   :  { %3101 = vmatprep.mubr.msk.f32.mxu0 %vm897_vm1, %v893_v10  ;;  %v1475_v10 = vld [vmem:[#allocation5 + $0x168] sm:$0xff] }
 0x21a   :  { %3088 = vmatmul.mubr.msk.f32.vlgmr.msra.gmra.mrb[8].mxu1 %vm92_vm0, %v446_v48 }
 0x21b   :  { %3090 = vmatprep.mubr.msk.f32.mxu1 %vm92_vm0, %v450_v63 }
 0x21e   :  { %3091 = vmatmul.mubr.msk.f32.gmra.mrb[10].mxu1 %vm92_vm0, %v452_v0 }
 0x21f   :  { %3135 = vmatprep.mubr.msk.f32.mxu1 %vm1205_vm7, %v1203_v54  ;;  %v1732_v54 = vld [vmem:[#allocation5 + $0x1e0] sm:$0xff] }
 0x26f   :  { %v3023_v4 = vpop.f32.mrb[4].mxu0 }
 0x270   :  { %v3045_v5 = vpop.f32.mrb[4].mxu1  ;;  %v527_v6 = vpop.f32.mrb[5].mxu0 }
 0x271   :  { %v664_v7 = vmax.f32 %v3023_v4, %v3045_v5  ;;  %v644_v8 = vpop.f32.mrb[5].mxu1  ;;  %v3498_v5 = vpack.c.bf16 %v1377_v25, %v1376_v62  ;;  %v1564_v62 = vld [vmem:[#allocation5 + $0x1c8] sm:$0x3]  ;;  %v1650_v25 = vld [vmem:[#allocation5 + $0x1d8] sm:$0x3] }
 0x272   :  { %v663_v9 = vmax.f32 %v527_v6, %v644_v8  ;;  %v3526_v6 = vpack.c.bf16 %v1473_v2, %v1472_v1  ;;  %v1379_v8 = vld [vmem:[#allocation5 + $0xf8] sm:$0xff]  ;;  %v1836_v1 = vld [vmem:[#allocation5 + $0x1f0] sm:$0xff] }
 0x273   :  { %v1837_v2 = vld [vmem:[#allocation5 + $0x1f8] sm:$0xff] }
 0x2e2   :  { %v3026_v11 = vpop.f32.mrb[6].mxu0  ;;  %v3048_v12 = vpop.f32.mrb[6].mxu1 }
 0x2e3   :  { %v666_v13 = vmax.f32 %v3026_v11, %v3048_v12  ;;  %v537_v14 = vpop.f32.mrb[7].mxu0  ;;  %v654_v15 = vpop.f32.mrb[7].mxu1  ;;  %v1204_v11 = vld [vmem:[#allocation5 + $0xc8] sm:$0x3f]  ;;  %v1292_v12 = vld [vmem:[#allocation5 + $0xd8] sm:$0x3f] }
 0x2e4   :  { %v665_v16 = vmax.f32 %v537_v14, %v654_v15  ;;  %v1380_v15 = vld [vmem:[#allocation5 + $0x100] sm:$0xff] }
 0x2e6   :  { %v3067_v17 = vpop.f32.mrb[8].mxu0 }
 0x2e7   :  { %v777_v18 = vmax.f32 %v664_v7, %v3067_v17  ;;  %v757_v19 = vpop.f32.mrb[9].mxu0  ;;  %v1378_v7 = vld [vmem:[#allocation5 + $0xf0] sm:$0xff] }
 0x2e8   :  { %v776_v20 = vmax.f32 %v663_v9, %v757_v19  ;;  %v1474_v9 = vld [vmem:[#allocation5 + $0x160] sm:$0xff]  ;;  %v1476_v17 = vld [vmem:[#allocation5 + $0x170] sm:$0xff] }
 0x2e9   :  { %v3530_v14 = vpack.c.bf16 %v1475_v10, %v1474_v9  ;;  %v1842_v10 = vld [vmem:[#allocation5 + $0x220] sm:$0xff] }
 0x2ea   :  { %v3070_v21 = vpop.f32.mrb[10].mxu0 }
 0x2eb   :  { %v779_v26 = vmax.f32 %v666_v13, %v3070_v21  ;;  %v767_v27 = vpop.f32.mrb[11].mxu0  ;;  %v3502_v13 = vpack.c.bf16 %v1379_v8, %v1378_v7  ;;  %v1382_v21 = vld [vmem:[#allocation5 + $0x110] sm:$0xff] }
 0x2ec   :  { %v778_v28 = vmax.f32 %v665_v16, %v767_v27  ;;  %v1381_v16 = vld [vmem:[#allocation5 + $0x108] sm:$0xff]  ;;  %v1478_v27 = vld [vmem:[#allocation5 + $0x180] sm:$0xff]  ;;  %v1840_v8 = vld [vmem:[#allocation5 + $0x210] sm:$0xff] }
 0x2ed   :  { %v3089_v29 = vpop.f32.mrb[8].mxu1  ;;  %v3506_v19 = vpack.c.bf16 %v1381_v16, %v1380_v15  ;;  %v3579_v9 = vpack.c.bf16 %v1841_v45, %v1840_v8  ;;  %v1846_v16 = vld [vmem:[#allocation5 + $0x240] sm:$0xff]  ;;  %v2345_v8 = vld [vmem:[#allocation5 + $0x330] sm:$0xff]  ;;  %v2346_v45 = vld [vmem:[#allocation5 + $0x338] sm:$0xff] }
 0x2ee   :  { %v890_v30 = vmax.f32 %v777_v18, %v3089_v29  ;;  %v870_v31 = vpop.f32.mrb[9].mxu1  ;;  %v1477_v18 = vld [vmem:[#allocation5 + $0x178] sm:$0xff] }
 0x2ef   :  { %v889_v24 = vmax.f32 %v776_v20, %v870_v31  ;;  %v3534_v20 = vpack.c.bf16 %v1477_v18, %v1476_v17  ;;  %v1384_v31 = vld [vmem:[#allocation5 + $0x120] sm:$0xff]  ;;  %v1847_v17 = vld [vmem:[#allocation5 + $0x248] sm:$0xff] }
 0x2f0   :  { %v3588_v18 = vpack.c.bf16 %v1847_v17, %v1846_v16  ;;  %v2267_v16 = vld [vmem:[#allocation5 + $0x308] sm:$0xff]  ;;  %v2268_v17 = vld [vmem:[#allocation5 + $0x310] sm:$0xff] }
 0x2f1   :  { %v3460_v32 = vpack.c.bf16 %v890_v30, %v889_v24  ;;  %v3092_v33 = vpop.f32.mrb[10].mxu1  ;;  %v1385_v24 = vld [vmem:[#allocation5 + $0x128] sm:$0xff] }
 0x2f2   :  { %v892_v34 = vmax.f32 %v779_v26, %v3092_v33  ;;  %v880_v35 = vpop.f32.mrb[11].mxu1  ;;  %v1383_v26 = vld [vmem:[#allocation5 + $0x118] sm:$0xff] }
 0x2f3   :  { %v891_v36 = vmax.f32 %v778_v28, %v880_v35  ;;  %3461 = vmatprep.subr.bf16.mxu0 %v3460_v32  ;;  %v1479_v28 = vld [vmem:[#allocation5 + $0x188] sm:$0xff]  ;;  %v3510_v29 = vpack.c.bf16 %v1383_v26, %v1382_v21  ;;  %v1481_v33 = vld [vmem:[#allocation5 + $0x198] sm:$0xff]  ;;  %v1850_v26 = vld [vmem:[#allocation5 + $0x260] sm:$0xff] }
 0x2f4   :  { %3463 = vmatpush3.bf16.msra.mxu0 %v3460_v32  ;;  %v3538_v30 = vpack.c.bf16 %v1479_v28, %v1478_v27  ;;  %v1480_v32 = vld [vmem:[#allocation5 + $0x190] sm:$0xff]  ;;  %v1851_v27 = vld [vmem:[#allocation5 + $0x268] sm:$0xff] }
 0x2f5   :  { %v3464_v37 = vpack.c.bf16 %v892_v34, %v891_v36  ;;  %v3514_v34 = vpack.c.bf16 %v1385_v24, %v1384_v31  ;;  %v3542_v35 = vpack.c.bf16 %v1481_v33, %v1480_v32  ;;  %v1482_v36 = vld [vmem:[#allocation5 + $0x1a0] sm:$0xff]  ;;  %v3594_v28 = vpack.c.bf16 %v1851_v27, %v1850_v26  ;;  %v1855_v32 = vld [vmem:[#allocation5 + $0x288] sm:$0xff] }
 0x2f6   :  { %v1854_v24 = vld [vmem:[#allocation5 + $0x280] sm:$0xff] }
 0x2f7   :  { %3465 = vmatprep.subr.bf16.mxu0 %v3464_v37  ;;  %v3600_v33 = vpack.c.bf16 %v1855_v32, %v1854_v24  ;;  %v2347_v26 = vld [vmem:[#allocation5 + $0x340] sm:$0xff] }
 0x2f8   :  { %3467 = vmatpush3.bf16.msra.mxu0 %v3464_v37  ;;  %v1483_v37 = vld [vmem:[#allocation5 + $0x1a8] sm:$0xff] }
 0x2f9   :  { %3469 = vmatprep.subr.bf16.mxu0 %v3468_v38 }
 0x2fb   :  { %3102 = vmatmul.mubr.msk.f32.vlgmr.msra.gmra.mrb[12].mxu0 %vm897_vm1, %v894_v39  ;;  %v3546_v39 = vpack.c.bf16 %v1483_v37, %v1482_v36  ;;  %v1939_v36 = vld [vmem:[#allocation5 + $0x2a8] sm:$0xff] }
 0x2fc   :  { %3104 = vmatprep.mubr.msk.f32.mxu0 %vm897_vm1, %v895_v40  ;;  %3471 = vmatpush3.bf16.msra.mxu0 %v3468_v38  ;;  %v3518_v38 = vpack.c.bf16 %v1387_v23, %v1386_v22  ;;  %v1388_v40 = vld [vmem:[#allocation5 + $0x140] sm:$0xff]  ;;  %v1937_v22 = vld [vmem:[#allocation5 + $0x298] sm:$0xff] }
 0x2fd   :  { %3474 = vmatprep.subr.msk.bf16.mxu0 %vm4023_vm4, %v3472_v44  ;;  %v1938_v23 = vld [vmem:[#allocation5 + $0x2a0] sm:$0xff] }
 0x2ff   :  { %3105 = vmatmul.mubr.msk.f32.gmra.mrb[14].mxu0 %vm897_vm1, %v896_v41  ;;  %v1389_v41 = vld [vmem:[#allocation5 + $0x148] sm:$0xff] }
 0x300   :  { %v3522_v43 = vpack.c.bf16 %v1389_v41, %v1388_v40  ;;  %v1940_v40 = vld [vmem:[#allocation5 + $0x2b0] sm:$0xff] }
 0x3ce   :  { %v3103_v46 = vpop.f32.mrb[12].mxu0 }
 0x3cf   :  { %v976_v47 = vpop.f32.mrb[13].mxu0 }
 0x3d0   :  { %3111 = vmatprep.mubr.msk.f32.mxu0 %vm997_vm5, %v976_v47 }
 0x3d1   :  { %3112 = vmatmul.mubr.msk.f32.vlgmr.msra.gmra.mrb[16].mxu0 %vm997_vm5, %v3103_v46 }
 0x3d2   :  { %v3106_v48 = vpop.f32.mrb[14].mxu0  ;;  %3477 = vmatpush3.bf16.msk.msra.mxu0 %vm4023_vm4, %v3472_v44  ;;  %v1485_v44 = vld [vmem:[#allocation5 + $0x1b8] sm:$0xff] }
 0x3d3   :  { %v986_v49 = vpop.f32.mrb[15].mxu0  ;;  %v3550_v46 = vpack.c.bf16 %v1485_v44, %v1484_v42  ;;  %v1941_v44 = vld [vmem:[#allocation5 + $0x2b8] sm:$0xff] }
 0x3d4   :  { %3114 = vmatprep.mubr.msk.f32.mxu0 %vm997_vm5, %v986_v49 }
 0x3d5   :  { %3115 = vmatmul.mubr.msk.f32.gmra.mrb[18].mxu0 %vm997_vm5, %v3106_v48 }
 0x4a4   :  { %v3113_v50 = vpop.f32.mrb[16].mxu0 }
 0x4a5   :  { %v1076_v51 = vpop.f32.mrb[17].mxu0 }
 0x4a6   :  { %3121 = vmatprep.mubr.msk.f32.mxu0 %vm1097_vm6, %v1076_v51 }
 0x4a7   :  { %3122 = vmatmul.mubr.msk.f32.vlgmr.msra.gmra.mrb[20].mxu0 %vm1097_vm6, %v3113_v50 }
 0x4a8   :  { %v3116_v52 = vpop.f32.mrb[18].mxu0 }
 0x4a9   :  { %v1086_v53 = vpop.f32.mrb[19].mxu0 }
 0x4aa   :  { %3124 = vmatprep.mubr.msk.f32.mxu0 %vm1097_vm6, %v1086_v53  ;;  %v1563_v53 = vld [vmem:[#allocation5 + $0x1c0] sm:$0xff] }
 0x4ab   :  { %3125 = vmatmul.mubr.msk.f32.gmra.mrb[22].mxu0 %vm1097_vm6, %v3116_v52 }
 0x4ac   :  { %3146 = vmatprep.mubr.msk.f32.mxu0 %vm1205_vm7, %v1291_v55 }
 0x57a   :  { %v3123_v56 = vpop.f32.mrb[20].mxu0 }
 0x57b   :  { %v1200_v57 = vmax.f32 %v3123_v56, 0.0  ;;  %v1180_v58 = vpop.f32.mrb[21].mxu0 }
 0x57c   :  { %v1199_v59 = vmax.f32 %v1180_v58, 0.0 }
 0x57e   :  { %v3478_v60 = vpack.c.bf16 %v1200_v57, %v1199_v59  ;;  %v3126_v61 = vpop.f32.mrb[22].mxu0 }
 0x57f   :  { %v1202_v63 = vmax.f32 %v3126_v61, 0.0  ;;  %v1190_v0 = vpop.f32.mrb[23].mxu0 }
 0x580   :  { %v1201_v3 = vmax.f32 %v1190_v0, 0.0  ;;  %3479 = vmatprep.subr.bf16.mxu1 %v3478_v60  ;;  %3489 = vmatprep.subr.bf16.mxu0 %v3478_v60  ;;  %v1649_v0 = vld [vmem:[#allocation5 + $0x1d0] sm:$0xff] }
 0x581   :  { %3481 = vmatpush3.bf16.msra.mxu1 %v3478_v60  ;;  %3491 = vmatpush3.bf16.msra.mxu0 %v3478_v60 }
 0x582   :  { %v3482_v4 = vpack.c.bf16 %v1202_v63, %v1201_v3  ;;  %v1733_v63 = vld [vmem:[#allocation5 + $0x1e8] sm:$0x3]  ;;  %v1838_v3 = vld [vmem:[#allocation5 + $0x200] sm:$0xff] }
 0x584   :  { %3484 = vmatprep.subr.msk.bf16.mxu1 %vm3483_vm9, %v3482_v4  ;;  %3494 = vmatprep.subr.msk.bf16.mxu0 %vm3483_vm9, %v3482_v4 }
 0x585   :  { %3487 = vmatpush3.bf16.msk.msra.mxu1 %vm3483_vm9, %v3482_v4  ;;  %3497 = vmatpush3.bf16.msk.msra.mxu0 %vm3483_vm9, %v3482_v4  ;;  %v3865_v4 = vmov 0.0|0.0  }
 0x586   :  { %3499 = vmatprep.subr.bf16.mxu1 %v3498_v5  ;;  %3527 = vmatprep.subr.bf16.mxu0 %v3526_v6 }
 0x588   :  { %3136 = vmatmul.mubr.msk.f32.vlgmr.msra.gmra.mrb[12].mxu1 %vm1205_vm7, %v1204_v11  ;;  %3147 = vmatmul.mubr.msk.f32.vlgmr.msra.gmra.mrb[24].mxu0 %vm1205_vm7, %v1292_v12  ;;  %v1843_v11 = vld [vmem:[#allocation5 + $0x228] sm:$0xff] }
 0x589   :  { %3501 = vmatpush3.bf16.msra.mxu1 %v3498_v5  ;;  %3529 = vmatpush3.bf16.msra.mxu0 %v3526_v6  ;;  %v3573_v5 = vpack.c.bf16 %v1837_v2, %v1836_v1  ;;  %v1839_v6 = vld [vmem:[#allocation5 + $0x208] sm:$0xff]  ;;  %v3582_v12 = vpack.c.bf16 %v1843_v11, %v1842_v10 }
 0x58a   :  { %3503 = vmatprep.subr.bf16.mxu1 %v3502_v13  ;;  %3531 = vmatprep.subr.bf16.mxu0 %v3530_v14  ;;  %v3576_v7 = vpack.c.bf16 %v1839_v6, %v1838_v3 }
 0x58d   :  { %3505 = vmatpush3.bf16.msra.mxu1 %v3502_v13  ;;  %3533 = vmatpush3.bf16.msra.mxu0 %v3530_v14  ;;  %v1844_v13 = vld [vmem:[#allocation5 + $0x230] sm:$0xff]  ;;  %v1845_v14 = vld [vmem:[#allocation5 + $0x238] sm:$0xff] }
 0x58e   :  { %3507 = vmatprep.subr.bf16.mxu1 %v3506_v19  ;;  %3535 = vmatprep.subr.bf16.mxu0 %v3534_v20  ;;  %v3585_v15 = vpack.c.bf16 %v1845_v14, %v1844_v13 }
 0x591   :  { %3509 = vmatpush3.bf16.msra.mxu1 %v3506_v19  ;;  %3537 = vmatpush3.bf16.msra.mxu0 %v3534_v20  ;;  %v1848_v19 = vld [vmem:[#allocation5 + $0x250] sm:$0xff]  ;;  %v1849_v20 = vld [vmem:[#allocation5 + $0x258] sm:$0xff] }
 0x592   :  { %3511 = vmatprep.subr.bf16.mxu1 %v3510_v29  ;;  %3539 = vmatprep.subr.bf16.mxu0 %v3538_v30  ;;  %v3591_v21 = vpack.c.bf16 %v1849_v20, %v1848_v19  ;;  %v3631_v19 = vpack.c.bf16 %v2268_v17, %v2267_v16  ;;  %v2269_v20 = vld [vmem:[#allocation5 + $0x318] sm:$0xff] }
 0x595   :  { %3513 = vmatpush3.bf16.msra.mxu1 %v3510_v29  ;;  %3541 = vmatpush3.bf16.msra.mxu0 %v3538_v30  ;;  %v1852_v29 = vld [vmem:[#allocation5 + $0x270] sm:$0xff]  ;;  %v1853_v30 = vld [vmem:[#allocation5 + $0x278] sm:$0xff] }
 0x596   :  { %3515 = vmatprep.subr.bf16.mxu1 %v3514_v34  ;;  %3543 = vmatprep.subr.bf16.mxu0 %v3542_v35  ;;  %v3597_v31 = vpack.c.bf16 %v1853_v30, %v1852_v29  ;;  %v2271_v30 = vld [vmem:[#allocation5 + $0x328] sm:$0xff] }
 0x599   :  { %3517 = vmatpush3.bf16.msra.mxu1 %v3514_v34  ;;  %3545 = vmatpush3.bf16.msra.mxu0 %v3542_v35  ;;  %v1856_v34 = vld [vmem:[#allocation5 + $0x290] sm:$0xff]  ;;  %v3866_v35 = vmov 0.0  }
 0x59a   :  { %3519 = vmatprep.subr.bf16.mxu1 %v3518_v38  ;;  %3547 = vmatprep.subr.bf16.mxu0 %v3546_v39 }
 0x59d   :  { %3521 = vmatpush3.bf16.msra.mxu1 %v3518_v38  ;;  %3549 = vmatpush3.bf16.msra.mxu0 %v3546_v39  ;;  %v3602_v39 = vpack.c.bf16 %v1938_v23, %v1937_v22  ;;  %v2432_v23 = vld [vmem:[#allocation5 + $0x358] sm:$0xff] }
 0x59e   :  { %3523 = vmatprep.subr.bf16.mxu1 %v3522_v43  ;;  %3551 = vmatprep.subr.bf16.mxu0 %v3550_v46 }
 0x5a1   :  { %3525 = vmatpush3.bf16.msra.mxu1 %v3522_v43  ;;  %3553 = vmatpush3.bf16.msra.mxu0 %v3550_v46  ;;  %v3606_v43 = vpack.c.bf16 %v1940_v40, %v1939_v36  ;;  %v1942_v46 = vld [vmem:[#allocation5 + $0x2c0] sm:$0xff] }
 0x5a2   :  { %v2433_v36 = vld [vmem:[#allocation5 + $0x360] sm:$0xff] }
 0x65b   :  { %v3137_v47 = vpop.f32.mrb[12].mxu1  ;;  %v3148_v48 = vpop.f32.mrb[24].mxu0 }
 0x65c   :  { %v1375_v49 = vmax.f32 %v3137_v47, %v3148_v48  ;;  %v1282_v50 = vpop.f32.mrb[13].mxu1  ;;  %v1365_v51 = vpop.f32.mrb[25].mxu0  ;;  %v3610_v48 = vpack.c.bf16 %v1942_v46, %v1941_v44  ;;  %v2518_v46 = vld [vmem:[#allocation5 + $0x398] sm:$0xff] }
 0x65d   :  { %v1374_v52 = vmax.f32 %v1282_v50, %v1365_v51 }
 0x65f   :  { %3177 = vmatprep.mubr.msk.f32.mxu1 %vm1390_vm10, %v1374_v52  ;;  %3208 = vmatprep.mubr.msk.f32.mxu0 %vm1390_vm10, %v1374_v52 }
 0x660   :  { %3178 = vmatmul.mubr.msk.f32.vlgmr.msra.gmra.mrb[14].mxu1 %vm1390_vm10, %v1375_v49  ;;  %3209 = vmatmul.mubr.msk.f32.vlgmr.msra.gmra.mrb[26].mxu0 %vm1390_vm10, %v1375_v49 }
 0x661   :  { %3215 = vmatprep.mubr.msk.f32.mxu1 %vm1097_vm6, %v1563_v53  ;;  %3229 = vmatprep.mubr.msk.f32.mxu0 %vm1097_vm6, %v1732_v54 }
 0x733   :  { %v3179_v55 = vpop.f32.mrb[14].mxu1  ;;  %v3210_v56 = vpop.f32.mrb[26].mxu0 }
 0x734   :  { %v1562_v57 = vmax.f32 %v3179_v55, %v3210_v56  ;;  %v1463_v58 = vpop.f32.mrb[15].mxu1  ;;  %v1552_v59 = vpop.f32.mrb[27].mxu0 }
 0x735   :  { %v1561_v60 = vmax.f32 %v1463_v58, %v1552_v59  ;;  %v1943_v58 = vld [vmem:[#allocation5 + $0x2c8] sm:$0xff]  ;;  %v2025_v59 = vld [vmem:[#allocation5 + $0x2d0] sm:$0xff] }
 0x737   :  { %v3554_v61 = vpack.c.bf16 %v1562_v57, %v1561_v60  ;;  %v2026_v60 = vld [vmem:[#allocation5 + $0x2d8] sm:$0xff] }
 0x739   :  { %3556 = vmatprep.subr.msk.bf16.mxu1 %vm4023_vm4, %v3554_v61  ;;  %3568 = vmatprep.subr.msk.bf16.mxu0 %vm4023_vm4, %v3554_v61 }
 0x73a   :  { %3559 = vmatpush3.bf16.msk.msra.mxu1 %vm4023_vm4, %v3554_v61  ;;  %3571 = vmatpush3.bf16.msk.msra.mxu0 %vm4023_vm4, %v3554_v61 }
 0x73b   :  { %3562 = vmatprep.subr.msk.bf16.mxu1 %vm4023_vm4, %v3554_v61  ;;  %3603 = vmatprep.subr.bf16.mxu0 %v3602_v39 }
 0x73d   :  { %3216 = vmatmul.mubr.msk.f32.vlgmr.msra.gmra.mrb[16].mxu1 %vm1097_vm6, %v1564_v62  ;;  %3230 = vmatmul.mubr.msk.f32.vlgmr.msra.gmra.mrb[28].mxu0 %vm1097_vm6, %v1733_v63  ;;  %v2027_v63 = vld [vmem:[#allocation5 + $0x2e0] sm:$0xff] }
 0x73e   :  { %3565 = vmatpush3.bf16.msk.msra.mxu1 %vm4023_vm4, %v3554_v61  ;;  %3222 = vmatprep.mubr.msk.f32.mxu1 %vm1097_vm6, %v1649_v0  ;;  %v3614_v61 = vpack.c.bf16 %v2026_v60, %v2025_v59  ;;  %v2028_v0 = vld [vmem:[#allocation5 + $0x2e8] sm:$0xff]  ;;  %v2521_v60 = vld [vmem:[#allocation5 + $0x3b0] sm:$0xff]  ;;  %vm2601_vm4 = vcmask 74752  }
 0x73f   :  { %3572 = vmatprep.subr.bf16.mxu1 %v3865_v4  ;;  %3605 = vmatpush3.bf16.msra.mxu0 %v3602_v39  ;;  %v3618_v1 = vpack.c.bf16 %v2028_v0, %v2027_v63  ;;  %v2435_v39 = vld [vmem:[#allocation5 + $0x370] sm:$0xff]  ;;  %v2713_v63 = vld [vmem:[#allocation5 + $0x378] ss:$0 sm:$0xff] }
 0x740   :  { %3607 = vmatprep.subr.bf16.mxu0 %v3606_v43 }
 0x741   :  { %3223 = vmatmul.mubr.msk.f32.vlgmr.msra.gmra.mrb[18].mxu1 %vm1097_vm6, %v1650_v25 }
 0x742   :  { %3574 = vmatpush1.bf16.msra.mxu1 %v3573_v5  ;;  %v2029_v5 = vld [vmem:[#allocation5 + $0x2f0] sm:$0xff] }
 0x743   :  { %3575 = vmatprep.subr.bf16.mxu1 %v3865_v4  ;;  %3609 = vmatpush3.bf16.msra.mxu0 %v3606_v43  ;;  %v2517_v43 = vld [vmem:[#allocation5 + $0x390] sm:$0xff] }
 0x744   :  { %3611 = vmatprep.subr.bf16.mxu0 %v3610_v48 }
 0x746   :  { %3577 = vmatpush1.bf16.msra.mxu1 %v3576_v7 }
 0x747   :  { %3578 = vmatprep.subr.bf16.mxu1 %v3865_v4  ;;  %3613 = vmatpush3.bf16.msra.mxu0 %v3610_v48 }
 0x748   :  { %3244 = vmatprep.subr.mxu0 %v1943_v58 }
 0x74a   :  { %3580 = vmatpush1.bf16.msra.mxu1 %v3579_v9  ;;  %v3637_v9 = vpack.c.bf16 %v2346_v45, %v2345_v8 }
 0x74b   :  { %3581 = vmatprep.subr.bf16.mxu1 %v3865_v4  ;;  %3245 = vmatpush3.msra.mxu0 %v1943_v58 }
 0x74c   :  { %3615 = vmatprep.subr.bf16.mxu0 %v3614_v61 }
 0x74e   :  { %3583 = vmatpush1.bf16.msra.mxu1 %v3582_v12 }
 0x74f   :  { %3584 = vmatprep.subr.bf16.mxu1 %v3865_v4 }
 0x752   :  { %3586 = vmatpush1.bf16.msra.mxu1 %v3585_v15  ;;  %v2113_v15 = vld [vmem:[#allocation5 + $0x2f8] sm:$0xf] }
 0x753   :  { %3587 = vmatprep.subr.bf16.mxu1 %v3865_v4 }
 0x756   :  { %3589 = vmatpush1.bf16.msra.mxu1 %v3588_v18  ;;  %v2192_v18 = vld [vmem:[#allocation5 + $0x300] sm:$0xf] }
 0x757   :  { %3590 = vmatprep.subr.bf16.mxu1 %v3865_v4 }
 0x75a   :  { %3592 = vmatpush1.bf16.msra.mxu1 %v3591_v21  ;;  %v2270_v21 = vld [vmem:[#allocation5 + $0x320] sm:$0xff] }
 0x75b   :  { %3593 = vmatprep.subr.bf16.mxu1 %v3865_v4  ;;  %v3634_v27 = vpack.c.bf16 %v2270_v21, %v2269_v20 }
 0x75e   :  { %3595 = vmatpush1.bf16.msra.mxu1 %v3594_v28  ;;  %v2348_v28 = vld [vmem:[#allocation5 + $0x348] sm:$0xff] }
 0x75f   :  { %3596 = vmatprep.subr.bf16.mxu1 %v3865_v4  ;;  %v3640_v29 = vpack.c.bf16 %v2348_v28, %v2347_v26 }
 0x762   :  { %3598 = vmatpush1.bf16.msra.mxu1 %v3597_v31  ;;  %v2349_v31 = vld [vmem:[#allocation5 + $0x350] sm:$0xff] }
 0x763   :  { %3599 = vmatprep.subr.bf16.mxu1 %v3865_v4 }
 0x766   :  { %3601 = vmatpush1.bf16.msra.mxu1 %v3600_v33 }
 0x767   :  { %1902 = vmatprep.subr.mxu1 %v3866_v35 }
 0x76a   :  { %1903 = vmatpush1.msra.mxu1 %v1856_v34 }
 0x76b   :  { %3636 = vmatprep.subr.bf16.mxu1 %v3865_v4 }
 0x810   :  { %v3217_v37 = vpop.f32.mrb[16].mxu1  ;;  %v3231_v38 = vpop.f32.mrb[28].mxu0 }
 0x811   :  { %v1640_v41 = vpop.f32.mrb[17].mxu1  ;;  %v1806_v42 = vpop.f32.mrb[29].mxu0 }
 0x812   :  { %1825 = vrot.lane.b32.xlu1 %v1806_v42, %s3861_s1  ;;  %v2516_v42 = vld [vmem:[#allocation5 + $0x388] sm:$0xff] }
 0x814   :  { %v3224_v47 = vpop.f32.mrb[18].mxu1 }
 0x815   :  { %v1723_v49 = vpop.f32.mrb[19].mxu1 }
 0x816   :  { %1827 = vrot.lane.b32.xlu1 %v3231_v38, %s3861_s1  ;;  %1817 = vrot.lane.b32.xlu0 %v1723_v49, %s3867_s13  ;;  %v2434_v38 = vld [vmem:[#allocation5 + $0x368] sm:$0xff] }
 0x817   :  { %v3646_v40 = vpack.c.bf16 %v2435_v39, %v2434_v38 }
 0x81a   :  { %1819 = vrot.lane.b32.xlu0 %v3224_v47, %s3867_s13  ;;  %v3652_v47 = vpack.c.bf16 %v2518_v46, %v2517_v43 }
 0x884   :  { %v1826_v50 = vpop.permute.xlu1 %1825 }
 0x885   :  { %2701 = vmatprep.mubr.msk.f32.mxu1 %vm1857_vm11, %v1826_v50 }
 0x888   :  { %v1818_v51 = vpop.permute.xlu0 %1817  ;;  %v1828_v54 = vpop.permute.xlu1 %1827 }
 0x889   :  { %v1832_v52 = vsel %vm1831_vm12, %v1640_v41, %v1818_v51  ;;  %v2515_v41 = vld [vmem:[#allocation5 + $0x380] sm:$0xff] }
 0x88a   :  { %v1834_v53 = vsel %vm1390_vm10, %v1832_v52, %v1826_v50  ;;  %v3649_v44 = vpack.c.bf16 %v2516_v42, %v2515_v41  ;;  %v2520_v50 = vld [vmem:[#allocation5 + $0x3a8] sm:$0xff] }
 0x88b   :  { %1927 = vmatmul.mubr.f32.vlgmr.msra.gmra.mrb[20].mxu1 %v1834_v53 }
 0x88c   :  { %2702 = vmatprep.mubr.msk.f32.mxu1 %vm1857_vm11, %v1828_v54  ;;  %v1820_v55 = vpop.permute.xlu0 %1819  ;;  %3638 = vmatpush3.bf16.msra.mxu1 %v3637_v9 }
 0x88d   :  { %v1833_v56 = vsel %vm1831_vm12, %v3217_v37, %v1820_v55  ;;  %3639 = vmatprep.subr.bf16.mxu1 %v3865_v4  ;;  %v3643_v37 = vpack.c.bf16 %v2433_v36, %v2432_v23 }
 0x88e   :  { %v1835_v57 = vsel %vm1390_vm10, %v1833_v56, %v1828_v54 }
 0x88f   :  { %1932 = vmatmul.mubr.f32.gmra.mrb[22].mxu1 %v1835_v57 }
 0x890   :  { %3299 = vmatprep.mubr.msk.f32.mxu1 %vm3868_vm13, %v3866_v35  ;;  %3641 = vmatpush3.bf16.msra.mxu1 %v3640_v29 }
 0x891   :  { %3297 = vmatprep.subr.mxu1 %v3866_v35 }
 0x894   :  { %3298 = vmatpush3.msra.mxu1 %v2349_v31 }
 0x895   :  { %3648 = vmatprep.subr.bf16.mxu1 %v3865_v4 }
 0x95e   :  { %v1928_v62 = vpop.f32.mrb[20].mxu1 }
 0x95f   :  { %v1930_v25 = vpop.f32.mrb[21].mxu1  ;;  %3246 = vmatprep.mubr.msk.f32.mxu0 %vm1831_vm12, %v1928_v62 }
 0x962   :  { %v1933_v2 = vpop.f32.mrb[22].mxu1 }
 0x963   :  { %v1935_v3 = vpop.f32.mrb[23].mxu1  ;;  %3247 = vmatmul.mubr.msk.f32.vlgmr.msra.gmra.mrb[30].mxu0 %vm1831_vm12, %v1933_v2 }
 0x964   :  { %3617 = vmatpush3.bf16.msra.mxu0 %v3614_v61  ;;  %v2522_v61 = vld [vmem:[#allocation5 + $0x3b8] sm:$0xff] }
 0x965   :  { %3619 = vmatprep.subr.bf16.mxu0 %v3618_v1  ;;  %v3658_v62 = vpack.c.bf16 %v2522_v61, %v2521_v60 }
 0x968   :  { %3621 = vmatpush3.bf16.msra.mxu0 %v3618_v1 }
 0x969   :  { %3257 = vmatprep.subr.mxu0 %v2029_v5 }
 0x96c   :  { %3258 = vmatpush3.msra.mxu0 %v2029_v5 }
 0x96d   :  { %3622 = vmatprep.subr.bf16.mxu0 %v3865_v4 }
 0xa36   :  { %v3248_v6 = vpop.f32.mrb[30].mxu0 }
 0xa37   :  { %v2016_v7 = vpop.f32.mrb[31].mxu0 }
 0xa38   :  { %3259 = vmatprep.mubr.msk.f32.mxu0 %vm1857_vm11, %v2016_v7 }
 0xa39   :  { %3260 = vmatmul.mubr.msk.f32.vlgmr.msra.gmra.mrb[32].mxu0 %vm1857_vm11, %v3248_v6 }
 0xa3a   :  { %3266 = vmatprep.mubr.msk.f32.mxu0 %vm3868_vm13, %v3866_v35 }
 0xb0c   :  { %v3261_v10 = vpop.f32.mrb[32].mxu0 }
 0xb0d   :  { %v2112_v11 = vmax.f32 %v3261_v10, 0.0  ;;  %v2102_v12 = vpop.f32.mrb[33].mxu0 }
 0xb0e   :  { %v2111_v13 = vmax.f32 %v2102_v12, 0.0 }
 0xb10   :  { %v3623_v14 = vpack.c.bf16 %v2112_v11, %v2111_v13 }
 0xb12   :  { %3625 = vmatpush3.bf16.msk.msra.mxu0 %vm3624_vm15, %v3623_v14 }
 0xb13   :  { %3626 = vmatprep.subr.bf16.mxu0 %v3865_v4 }
 0xb15   :  { %3267 = vmatmul.mubr.msk.f32.vlgmr.msra.gmra.mrb[34].mxu0 %vm2114_vm2, %v2113_v15 }
 0xb16   :  { %3629 = vmatpush3.bf16.msk.msra.mxu0 %vm3624_vm15, %v3623_v14  ;;  %3273 = vmatprep.mubr.msk.f32.mxu0 %vm3868_vm13, %v3866_v35 }
 0xb17   :  { %3630 = vmatprep.subr.bf16.mxu0 %v3865_v4 }
 0xb19   :  { %3274 = vmatmul.mubr.msk.f32.vlgmr.msra.gmra.mrb[36].mxu0 %vm2114_vm2, %v2192_v18 }
 0xb1a   :  { %3632 = vmatpush3.bf16.msra.mxu0 %v3631_v19  ;;  %3286 = vmatprep.mubr.msk.f32.mxu0 %vm3868_vm13, %v3866_v35 }
 0xb1b   :  { %3633 = vmatprep.subr.bf16.mxu0 %v3865_v4 }
 0xb1e   :  { %3635 = vmatpush3.bf16.msra.mxu0 %v3634_v27 }
 0xb1f   :  { %3284 = vmatprep.subr.mxu0 %v3866_v35 }
 0xb22   :  { %3285 = vmatpush3.msra.mxu0 %v2271_v30 }
 0xb23   :  { %3642 = vmatprep.subr.bf16.mxu0 %v3865_v4 }
 0xbe8   :  { %v2188_v24 = vpop.f32.mrb[34].mxu0 }
 0xbe9   :  { %v3268_v32 = vpop.f32.mrb[35].mxu0 }
 0xbec   :  { %v2262_v33 = vpop.f32.mrb[36].mxu0 }
 0xbed   :  { %v2266_v34 = vmax.f32 %v2188_v24, %v2262_v33  ;;  %v3275_v22 = vpop.f32.mrb[37].mxu0 }
 0xbef   :  { %3287 = vmatmul.mubr.msk.f32.vlgmr.msra.gmra.mrb[38].mxu0 %vm1857_vm11, %v2266_v34  ;;  %3300 = vmatmul.mubr.msk.f32.vlgmr.msra.gmra.mrb[24].mxu1 %vm1857_vm11, %v2266_v34 }
 0xbf0   :  { %3310 = vmatprep.mubr.msk.f32.mxu0 %vm3868_vm13, %v3866_v35  ;;  %3329 = vmatprep.mubr.msk.f32.mxu1 %vm3868_vm13, %v3866_v35  ;;  %v2519_v35 = vld [vmem:[#allocation5 + $0x3a0] sm:$0xff] }
 0xbf1   :  { %3644 = vmatpush3.bf16.msra.mxu0 %v3643_v37  ;;  %3650 = vmatpush3.bf16.msra.mxu1 %v3649_v44  ;;  %v3655_v55 = vpack.c.bf16 %v2520_v50, %v2519_v35 }
 0xbf2   :  { %3645 = vmatprep.subr.bf16.mxu0 %v3865_v4  ;;  %3651 = vmatprep.subr.bf16.mxu1 %v3865_v4 }
 0xbf5   :  { %3647 = vmatpush3.bf16.msra.mxu0 %v3646_v40  ;;  %3653 = vmatpush3.bf16.msra.mxu1 %v3652_v47 }
 0xbf6   :  { %3654 = vmatprep.subr.bf16.mxu1 %v3865_v4 }
 0xbf9   :  { %3656 = vmatpush3.bf16.msra.mxu1 %v3655_v55 }
 0xbfa   :  { %3657 = vmatprep.subr.bf16.mxu1 %v3865_v4  ;;  %v2715_v4 = vld [vmem:[#allocation5 + $0x3c0] ss:$0 sm:$0xff] }
 0xbfd   :  { %3659 = vmatpush3.bf16.msra.mxu1 %v3658_v62 }
 0xcc2   :  { %v2341_v48 = vpop.f32.mrb[38].mxu0  ;;  %v2416_v49 = vpop.f32.mrb[24].mxu1 }
 0xcc3   :  { %v2420_v51 = vmax.f32 %v2341_v48, %v2416_v49  ;;  %v3288_v52 = vpop.f32.mrb[39].mxu0  ;;  %v3301_v53 = vpop.f32.mrb[25].mxu1 }
 0xcc5   :  { %v2422_v54 = vrot.slane %v2420_v51, 1 }
 0xcc7   :  { %2423 = vrot.lane.b32.xlu0 %v2422_v54, %s3869_s14 }
 0xd39   :  { %v2424_v56 = vpop.permute.xlu0 %2423 }
 0xd3a   :  { %v2426_v57 = vsel %vm997_vm5, %v2420_v51, %v2424_v56 }
 0xd3b   :  { %v2428_v58 = vrot.slane %v2426_v57, 1 }
 0xd3d   :  { %v2431_v59 = vsel %vm2430_vm3, %v2426_v57, %v2428_v58 }
 0xd3e   :  { %3311 = vmatmul.mubr.msk.f32.vlgmr.msra.gmra.mrb[40].mxu0 %vm897_vm1, %v2431_v59 }
 0xe11   :  { %v2510_v0 = vpop.f32.mrb[40].mxu0 }
 0xe12   :  { %v2511_v25 = vadd.f32 %v2713_v63, %v2510_v0  ;;  %v3312_v1 = vpop.f32.mrb[41].mxu0 }
 0xe14   :  { %v2514_v2 = vmax.f32 %v2511_v25, 0.0 }
 0xe16   :  { %3330 = vmatmul.mubr.msk.f32.vlgmr.msra.gmra.mrb[26].mxu1 %vm92_vm0, %v2514_v2 }
 0xee9   :  { %v2597_v3 = vpop.f32.mrb[26].mxu1 }
 0xeea   :  { %v2598_v5 = vadd.f32 %v2715_v4, %v2597_v3  ;;  %v3331_v6 = vpop.f32.mrb[27].mxu1 }
 0xeec   :  { %v2602_v7 = vsel %vm2601_vm4, %v2598_v5, -inf  ;;  %2612 = vst.msk [vmem:[#allocation7] sm:$0x3] %vm2601_vm4, %v2598_v5 }
 0xeed   :  { %2603 = vmax.xlane.f32.xlu1 %v2602_v7 }
 0xf7a   :  { %v2604_v8 = vpop.xlane.xlu1 %2603 }
 0xf7b   :  { %v2605_v45 = vsub.f32 %v2598_v5, %v2604_v8 }
 0xf7d   :  { %v2606_v9 = vmul.f32 1.442695, %v2605_v45 }
 0xf7f   :  { %3756 = vpow2.f32 %v2606_v9 }
 0xf89   :  { %v3757_v10 = vpop.eup %3756 }
 0xf8a   :  { %v2608_v11 = vsel %vm2601_vm4, %v3757_v10, 0.0 }
 0xf8b   :  { %2609 = vadd.xlane.f32.xlu0 %v2608_v11 }
 0xf8c   :  { %3815 = shalt.err (!%p3812_p6)
}
 0xf8d   :  { %s3816_s20 = scalar_lea.hbm %s4151_s2, 32 }
 0xf8e   :  { %p3817_p7 = scmp.ne.s32.totalorder %s4151_s2, %s3816_s20  ;;  %p3820_p8 = scmp.lt.u32.totalorder %s3816_s20, %s4151_s2 }
 0xf90   :  { %p3822_p9 = pnand %p3820_p8, %p3817_p7 }
 0xf92   :  { %3825 = shalt.err (!%p3822_p9)
}
 0xf93   :  { %2624 = dma.vmem_to_hbm [thread:$0]  %s2622_s16, 32, %s4151_s2, [#allocation4]  }
 0xf94   :  { %s3871_s27 = smov [#allocation8]  }
 0xf95   :  { %s2631_s28 = sshll.u32 %s3871_s27, 4  ;;  %s2632_s28 = int_to_ptr.vmem [resolvable:$true] %s2631_s28 }
 0xf96   :  { %s3826_s29 = scalar_lea.vmem %s2632_s28, 32  ;;  %p3831_p11 = scmp.lt.s32.totalorder %s2632_s28, %s2632_s28 }
 0xf97   :  { %p3827_p10 = scmp.ne.s32.totalorder %s2632_s28, %s3826_s29  ;;  %p3832_p12 = scmp.lt.s32.totalorder %s3826_s29, %s3826_s29 }
 0xf99   :  { %p3833_p13 = por %p3832_p12, %p3831_p11 }
 0xf9b   :  { %p3834_p0 = pnand %p3833_p13, %p3827_p10 }
0x1018   :  { %v2610_v12 = vpop.xlane.xlu0 %2609 }
0x1019   :  { %3758 = vrcp.f32 %v2610_v12 }
0x1023   :  { %v3759_v13 = vpop.eup %3758 }
0x1024   :  { %v2613_v14 = vmul.f32 %v3759_v13, %v3757_v10 }
0x1026   :  { %2614 = vst.msk [vmem:[#allocation8] sm:$0x3] %vm2601_vm4, %v2613_v14 }
0x1027   :  { %3837 = shalt.err (!%p3834_p0)
}
0x1028   :  { %s3838_s2 = scalar_lea.hbm %s4152_s3, 32 }
0x1029   :  { %p3839_p1 = scmp.ne.s32.totalorder %s4152_s3, %s3838_s2  ;;  %p3842_p2 = scmp.lt.u32.totalorder %s3838_s2, %s4152_s3 }
0x102b   :  { %p3844_p3 = pnand %p3842_p2, %p3839_p1 }
0x102d   :  { %3847 = shalt.err (!%p3844_p3)
}
0x102e   :  { %2634 = dma.vmem_to_hbm [thread:$0]  %s2632_s28, 32, %s4152_s3, [#allocation9]  }
0x102f   :  { %3852 = dma.done.wait [#allocation4], 32  }
0x1030   :  { %3853 = vsyncadd [#allocation4], 4294967264 }
0x1031   :  { %3854 = dma.done.wait [#allocation9], 32  }
0x1032   :  { %3855 = vsyncadd [#allocation9], 4294967264 }
0x1033   :  { %2641 = vsyncpa [#allocation3], 1 }
0x1034   :  { %2642 = vsyncpa [#allocation6], 1 }
0x1035   :  { %2643 = vsyncpa [#allocation4], 1 }
0x1036   :  { %2644 = vsyncpa [#allocation9], 1 }

</bundles_post_ra>
